<compile_context>
chip_gen: v5e
topology: v5e:2x2
jax: 0.10.0
libtpu: 0.0.40
codegen_flags: <defaults>
</compile_context>

<pallas_src>
import functools
import math

import numpy as np
import jax
import jax.numpy as jnp
from jax.experimental import pallas as pl
from jax.experimental.pallas import tpu as pltpu


# ----------------------------------------------------------------------------- helpers

def _round_up(n, m):
    return (n + m - 1) // m * m


def _pad_rows(x, mult=128):
    """Zero-pad the leading (token) dim up to a multiple of `mult`."""
    m = x.shape[0]
    mp = _round_up(m, mult)
    if mp == m:
        return x, m
    return jnp.pad(x, ((0, mp - m), (0, 0))), m


def _nbytes(shape, dtype, bufs=2):
    return bufs * math.prod(shape) * np.dtype(dtype).itemsize


def _pick_tm(mp):
    """Token tile: largest of 512/256/128 dividing mp that leaves >=2 grid steps."""
    for cand in (512, 256, 128):
        if mp % cand == 0 and mp // cand >= 2:
            return cand
    return 128 if mp % 128 == 0 else mp


def _pick_tn(n, d, itemsize, budget):
    """Output-feature tile for the QKV projection (keeps MXU N >= 256, bounds VMEM)."""
    if n <= 512 or 2 * d * n * itemsize <= budget:
        return n
    for cand in (1024, 512, 256):
        if n % cand == 0 and 2 * d * cand * itemsize <= budget:
            return cand
    return n


def _pick_th(h, d, itemsize, budget):
    """Hidden-dim tile for the MLP reduction axis, sized against the VMEM budget."""
    for cand in (2048, 1024, 512, 256, 128):
        # 4*d*cand*itemsize ~= double-buffered W1 + W2 tiles for this th.
        if cand < h and h % cand == 0 and 4 * d * cand * itemsize <= budget:
            return cand
    return h if h <= 512 else 128


def _vmem_cap_bytes():
    """Per-chip scoped-VMEM cap: ~75% of physical (≈48 MiB v7x, ≈96 MiB v5e/v6e)."""
    try:
        phys = int(pltpu.get_tpu_info().vmem_capacity_bytes)
    except Exception:
        phys = 64 << 20          # conservative: assume v7x if the query is unavailable
    return max((phys * 3) // 4, 32 << 20)


def _vmem_limit(byte_estimate):
    """Explicit scoped-VMEM limit: tiles + headroom, clamped to the per-chip cap."""
    cap = _vmem_cap_bytes()
    return int(min(max(byte_estimate + (12 << 20), 32 << 20), cap))


_SINGLE_BUFFER_OK = None


def _single_buffer_supported():
    """Probe once whether pipeline_mode=pl.Buffered(1) lowers on this jax/libtpu."""
    global _SINGLE_BUFFER_OK
    if _SINGLE_BUFFER_OK is None:
        try:
            def _probe(x_ref, o_ref):
                o_ref[...] = x_ref[...] + 1.0

            spec = pl.BlockSpec((8, 128), lambda i: (0, 0), pipeline_mode=pl.Buffered(1))
            out = pl.pallas_call(
                _probe,
                out_shape=jax.ShapeDtypeStruct((16, 128), jnp.float32),
                grid=(2,),
                in_specs=[spec],
                out_specs=pl.BlockSpec((8, 128), lambda i: (i, 0)),
            )(jnp.zeros((8, 128), jnp.float32))
            jax.block_until_ready(out)
            _SINGLE_BUFFER_OK = True
        except Exception:            # fall back to default double buffering
            _SINGLE_BUFFER_OK = False
    return _SINGLE_BUFFER_OK


def _const_spec(shape, index_map):
    """BlockSpec for a constant-index block; single-buffered when supported."""
    if _single_buffer_supported():
        return pl.BlockSpec(shape, index_map, pipeline_mode=pl.Buffered(1))
    return pl.BlockSpec(shape, index_map)


# ----------------------------------------------------------------------------- kernel 1
# LayerNorm(ln_1) + c_attn QKV projection, token-tiled x output-feature-tiled.

def ln_qkv_kernel(x_ref, g_ref, b_ref, w_ref, bias_ref, o_ref):
    x = x_ref[...].astype(jnp.float32)                       # (tm, D), LN stats in f32
    mu = jnp.mean(x, axis=-1, keepdims=True)
    xc = x - mu
    var = jnp.mean(xc * xc, axis=-1, keepdims=True)
    xn = xc * jax.lax.rsqrt(var + 1e-5)
    xn = xn * g_ref[...].astype(jnp.float32) + b_ref[...].astype(jnp.float32)
    out = jnp.dot(xn.astype(w_ref.dtype), w_ref[...],        # bf16 MXU, f32 accumulate
                  preferred_element_type=jnp.float32)
    out = out + bias_ref[...].astype(jnp.float32)
    o_ref[...] = out.astype(o_ref.dtype)


def ln_qkv(x, gamma, beta, w, b, out_dtype):
    """LayerNorm(x) @ w + b.  x: (M, D), w: (D, N) bf16, b: (1, N) -> (M, N) out_dtype."""
    xp, m = _pad_rows(x)
    mp, d = xp.shape
    n = w.shape[1]
    tm = _pick_tm(mp)
    cap = _vmem_cap_bytes()
    tn = _pick_tn(n, d, np.dtype(w.dtype).itemsize, cap // 4)
    vmem = _vmem_limit(
        _nbytes((tm, d), xp.dtype) + 2 * _nbytes((1, d), gamma.dtype, bufs=1)
        + _nbytes((d, tn), w.dtype) + _nbytes((1, tn), b.dtype)
        + _nbytes((tm, tn), out_dtype) + 4 * tm * max(d, tn) * 4)
    out = pl.pallas_call(
        ln_qkv_kernel,
        out_shape=jax.ShapeDtypeStruct((mp, n), out_dtype),
        grid_spec=pltpu.PrefetchScalarGridSpec(
            num_scalar_prefetch=0,
            grid=(mp // tm, n // tn),
            in_specs=[
                pl.BlockSpec((tm, d), lambda i, j: (i, 0)),   # x token tile
                _const_spec((1, d), lambda i, j: (0, 0)),     # ln gamma (single-buffered)
                _const_spec((1, d), lambda i, j: (0, 0)),     # ln beta
                pl.BlockSpec((d, tn), lambda i, j: (0, j)),   # QKV weight tile over N
                pl.BlockSpec((1, tn), lambda i, j: (0, j)),   # QKV bias tile over N
            ],
            out_specs=pl.BlockSpec((tm, tn), lambda i, j: (i, j)),
        ),
        compiler_params=pltpu.CompilerParams(
            dimension_semantics=("parallel", "parallel"), vmem_limit_bytes=vmem),
    )(xp, gamma, beta, w, b)
    return out[:m]


# ----------------------------------------------------------------------------- kernel 2
# Causal SDPA over all heads of one batch element + fused c_proj + bias + residual.

def attn_proj_kernel(qkv_ref, res_ref, w_ref, b_ref, o_ref, *, n_head, sm_scale):
    t = qkv_ref.shape[1]
    c = res_ref.shape[2]
    hd = c // n_head
    qkv = qkv_ref[0]                                          # (T, 3C) bf16
    # causal mask shared by all heads (computed once)
    q_pos = jax.lax.broadcasted_iota(jnp.int32, (t, t), 0)
    k_pos = jax.lax.broadcasted_iota(jnp.int32, (t, t), 1)
    causal = k_pos <= q_pos
    heads = []
    for h in range(n_head):                                   # unrolled; n_head is small
        q = qkv[:, h * hd:(h + 1) * hd] * sm_scale            # fold 1/sqrt(hd) into q
        k = qkv[:, c + h * hd:c + (h + 1) * hd]
        v = qkv[:, 2 * c + h * hd:2 * c + (h + 1) * hd]
        s = jax.lax.dot_general(q, k, (((1,), (1,)), ((), ())),
                                preferred_element_type=jnp.float32)   # (T, T) f32
        s = jnp.where(causal, s, -1e30)
        m = jnp.max(s, axis=-1, keepdims=True)                # softmax stats stay f32
        p = jnp.exp(s - m)
        l = jnp.sum(p, axis=-1, keepdims=True)
        o = jnp.dot(p.astype(v.dtype), v, preferred_element_type=jnp.float32)
        heads.append(o * pl.reciprocal(l, approx=True))       # divide on the EUP slot
    y = jnp.concatenate(heads, axis=-1)                       # (T, C) f32, lane-dense
    out = jnp.dot(y.astype(w_ref.dtype), w_ref[...],          # fused c_proj
                  preferred_element_type=jnp.float32)
    out = out + b_ref[...].astype(jnp.float32) + res_ref[0].astype(jnp.float32)
    o_ref[0] = out.astype(o_ref.dtype)


def attn_proj_residual(qkv, x, w_proj, b_proj, n_head, out_dtype):
    """qkv: (B, T, 3C) bf16, x: (B, T, C) residual -> x + c_proj(SDPA(qkv)), (B, T, C)."""
    bsz, t, c3 = qkv.shape
    c = x.shape[-1]
    hd = c // n_head
    kern = functools.partial(attn_proj_kernel, n_head=n_head,
                             sm_scale=1.0 / math.sqrt(hd))
    w_bufs = 1 if _single_buffer_supported() else 2
    vmem = _vmem_limit(
        _nbytes((t, c3), qkv.dtype) + _nbytes((t, c), x.dtype)
        + _nbytes((c, c), w_proj.dtype, bufs=w_bufs) + _nbytes((1, c), b_proj.dtype, bufs=w_bufs)
        + _nbytes((t, c), out_dtype)
        + 3 * t * t * 4 + (n_head + 3) * t * hd * 4 + 2 * t * c * 4)   # s/p/mask + per-head o + y
    return pl.pallas_call(
        kern,
        out_shape=jax.ShapeDtypeStruct((bsz, t, c), out_dtype),
        grid_spec=pltpu.PrefetchScalarGridSpec(
            num_scalar_prefetch=0,
            grid=(bsz,),
            in_specs=[
                pl.BlockSpec((1, t, c3), lambda b: (b, 0, 0)),   # fused QKV, all heads
                pl.BlockSpec((1, t, c), lambda b: (b, 0, 0)),    # residual x
                _const_spec((c, c), lambda b: (0, 0)),           # c_proj weight
                _const_spec((1, c), lambda b: (0, 0)),           # c_proj bias
            ],
            out_specs=pl.BlockSpec((1, t, c), lambda b: (b, 0, 0)),
        ),
        compiler_params=pltpu.CompilerParams(
            dimension_semantics=("parallel",), vmem_limit_bytes=vmem),
    )(qkv, x, w_proj, b_proj)


# ----------------------------------------------------------------------------- kernel 3
# LayerNorm(ln_2) + MLP (c_fc -> GELU -> c_proj) + residual, H-tiled reduction grid.

def ln_mlp_residual_kernel(x_ref, g_ref, b_ref, w1_ref, b1_ref, w2_ref, b2_ref,
                           o_ref, xn_ref, acc_ref):
    k = pl.program_id(1)

    @pl.when(k == 0)
    def _():
        x = x_ref[...].astype(jnp.float32)
        mu = jnp.mean(x, axis=-1, keepdims=True)
        xc = x - mu
        var = jnp.mean(xc * xc, axis=-1, keepdims=True)
        xn = xc * jax.lax.rsqrt(var + 1e-5) * g_ref[...].astype(jnp.float32) \
             + b_ref[...].astype(jnp.float32)
        xn_ref[...] = xn.astype(xn_ref.dtype)                 # cache LN(x) as bf16 operand
        acc_ref[...] = jnp.zeros_like(acc_ref)

    # c_fc slice over the hidden dim + exact (erf) GELU, matching torch.nn.GELU()
    h = jnp.dot(xn_ref[...], w1_ref[...],
                preferred_element_type=jnp.float32) + b1_ref[...].astype(jnp.float32)
    h = 0.5 * h * (1.0 + jax.lax.erf(h * 0.7071067811865476))
    # partial c_proj contribution of this hidden slice, accumulated in f32
    acc_ref[...] += jnp.dot(h.astype(w2_ref.dtype), w2_ref[...],
                            preferred_element_type=jnp.float32)

    @pl.when(k == pl.num_programs(1) - 1)
    def _():
        out = acc_ref[...] + b2_ref[...].astype(jnp.float32) + x_ref[...].astype(jnp.float32)
        o_ref[...] = out.astype(o_ref.dtype)


def ln_mlp_residual(x, gamma, beta, w1, b1, w2, b2, out_dtype):
    """x + c_proj(GELU(c_fc(LayerNorm(x)))).   x: (M, D), w1: (D, H) bf16, w2: (H, D) bf16."""
    xp, m = _pad_rows(x)
    mp, d = xp.shape
    h = w1.shape[1]
    tm = _pick_tm(mp)
    cap = _vmem_cap_bytes()
    th = _pick_th(h, d, np.dtype(w1.dtype).itemsize, cap // 2)
    vmem = _vmem_limit(
        _nbytes((tm, d), xp.dtype) + 2 * _nbytes((1, d), gamma.dtype, bufs=1)
        + _nbytes((d, th), w1.dtype) + _nbytes((1, th), b1.dtype)
        + _nbytes((th, d), w2.dtype) + _nbytes((1, d), b2.dtype, bufs=1)
        + _nbytes((tm, d), out_dtype)
        + _nbytes((tm, d), w1.dtype, bufs=1) + _nbytes((tm, d), jnp.float32, bufs=1)
        + 3 * tm * th * 4)                                    # GELU intermediates
    out = pl.pallas_call(
        ln_mlp_residual_kernel,
        out_shape=jax.ShapeDtypeStruct((mp, d), out_dtype),
        grid_spec=pltpu.PrefetchScalarGridSpec(
            num_scalar_prefetch=0,
            grid=(mp // tm, h // th),                         # reduction (hidden) axis last
            in_specs=[
                pl.BlockSpec((tm, d), lambda i, k: (i, 0)),   # x (LN input + residual)
                _const_spec((1, d), lambda i, k: (0, 0)),     # ln gamma
                _const_spec((1, d), lambda i, k: (0, 0)),     # ln beta
                pl.BlockSpec((d, th), lambda i, k: (0, k)),   # W1 tile over H
                pl.BlockSpec((1, th), lambda i, k: (0, k)),   # b1 tile over H
                pl.BlockSpec((th, d), lambda i, k: (k, 0)),   # W2 tile over H
                _const_spec((1, d), lambda i, k: (0, 0)),     # b2
            ],
            out_specs=pl.BlockSpec((tm, d), lambda i, k: (i, 0)),
            scratch_shapes=[pltpu.VMEM((tm, d), w1.dtype),    # cached LayerNorm(x), bf16
                            pltpu.VMEM((tm, d), jnp.float32)],  # f32 output accumulator
        ),
        compiler_params=pltpu.CompilerParams(
            dimension_semantics=("parallel", "arbitrary"), vmem_limit_bytes=vmem),
    )(xp, gamma, beta, w1, b1, w2, b2)
    return out[:m]


# ----------------------------------------------------------------------------- Block forward

def gpt_block_forward(x, p, compute_dtype=jnp.bfloat16):
    """Full Block forward: x + attn(ln_1(x)); then + mlp(ln_2(x)).  x: (B, T, C)."""
    bsz, t, c = x.shape
    nh = p["n_head"]
    cd = compute_dtype
    x_flat = x.reshape(bsz * t, c)

    # MXU operands and inter-kernel activations in bf16; accumulation / LN / softmax in f32.
    qkv = ln_qkv(x_flat, p["ln1_g"], p["ln1_b"],
                 p["w_attn"].astype(cd), p["b_attn"], out_dtype=cd)          # (M, 3C) bf16
    x1 = attn_proj_residual(qkv.reshape(bsz, t, 3 * c), x,
                            p["w_proj"].astype(cd), p["b_proj"], nh,
                            out_dtype=cd)                                    # (B, T, C) bf16
    out = ln_mlp_residual(x1.reshape(bsz * t, c), p["ln2_g"], p["ln2_b"],
                          p["w_fc"].astype(cd), p["b_fc"],
                          p["w_mproj"].astype(cd), p["b_mproj"],
                          out_dtype=x.dtype)                                 # final in f32
    return out.reshape(bsz, t, c)


# ----------------------------------------------------------------------------- pure-JAX reference

def block_reference(x, p):
    bsz, t, c = x.shape
    nh = p["n_head"]
    hd = c // nh

    def ln(v, g, b):
        mu = jnp.mean(v, axis=-1, keepdims=True)
        var = jnp.mean((v - mu) ** 2, axis=-1, keepdims=True)
        return (v - mu) * jax.lax.rsqrt(var + 1e-5) * g + b

    h = ln(x, p["ln1_g"], p["ln1_b"])
    qkv = h @ p["w_attn"] + p["b_attn"]
    q, k, v = jnp.split(qkv, 3, axis=-1)
    q = q.reshape(bsz, t, nh, hd).transpose(0, 2, 1, 3)
    k = k.reshape(bsz, t, nh, hd).transpose(0, 2, 1, 3)
    v = v.reshape(bsz, t, nh, hd).transpose(0, 2, 1, 3)
    s = jnp.einsum("bhqd,bhkd->bhqk", q, k) / math.sqrt(hd)
    mask = jnp.tril(jnp.ones((t, t), dtype=bool))
    s = jnp.where(mask[None, None], s, -1e30)
    a = jax.nn.softmax(s, axis=-1)
    y = jnp.einsum("bhqk,bhkd->bhqd", a, v)
    y = y.transpose(0, 2, 1, 3).reshape(bsz, t, c)
    x = x + y @ p["w_proj"] + p["b_proj"]

    h2 = ln(x, p["ln2_g"], p["ln2_b"])
    hh = h2 @ p["w_fc"] + p["b_fc"]
    hh = 0.5 * hh * (1.0 + jax.lax.erf(hh * 0.7071067811865476))
    return x + hh @ p["w_mproj"] + p["b_mproj"]


# ----------------------------------------------------------------------------- demo

if __name__ == "__main__":
    # Small but lane-dense config consistent with the Block module:
    # n_embd=256 (multiple of 128), n_head=4, hidden=4*n_embd=1024, batch=2, seq=128.
    B, T, C, NH = 2, 128, 256, 4
    H = 4 * C

    key = jax.random.PRNGKey(0)
    ks = jax.random.split(key, 12)

    x = 0.5 * jax.random.normal(ks[0], (B, T, C), dtype=jnp.float32)

    def lin_init(kw, kb, fan_in, shape_w, shape_b):
        bound = 1.0 / math.sqrt(fan_in)
        return (jax.random.uniform(kw, shape_w, jnp.float32, -bound, bound),
                jax.random.uniform(kb, shape_b, jnp.float32, -bound, bound))

    w_attn, b_attn = lin_init(ks[1], ks[2], C, (C, 3 * C), (1, 3 * C))     # c_attn.weight.T / bias
    w_proj, b_proj = lin_init(ks[3], ks[4], C, (C, C), (1, C))             # attn c_proj
    w_fc, b_fc = lin_init(ks[5], ks[6], C, (C, H), (1, H))                 # mlp c_fc
    w_mproj, b_mproj = lin_init(ks[7], ks[8], H, (H, C), (1, C))           # mlp c_proj

    params = dict(
        n_head=NH,
        ln1_g=1.0 + 0.05 * jax.random.normal(ks[9], (1, C), jnp.float32),
        ln1_b=0.05 * jax.random.normal(ks[10], (1, C), jnp.float32),
        ln2_g=1.0 + 0.05 * jax.random.normal(ks[11], (1, C), jnp.float32),
        ln2_b=jnp.zeros((1, C), jnp.float32),
        w_attn=w_attn, b_attn=b_attn, w_proj=w_proj, b_proj=b_proj,
        w_fc=w_fc, b_fc=b_fc, w_mproj=w_mproj, b_mproj=b_mproj,
    )

    out = gpt_block_forward(x, params)              # bf16 activations, f32 accumulation
    out = jax.block_until_ready(out)

    with jax.default_matmul_precision("highest"):
        ref = block_reference(x, params)            # pure f32 reference
    ref = jax.block_until_ready(ref)

    err = float(jnp.max(jnp.abs(out - ref)))
    scale = float(jnp.max(jnp.abs(ref)))
    # bf16 activations / MXU operands -> expect ~1e-2 abs error at these magnitudes.
    assert err < max(7.5e-2, 3e-2 * scale), f"mismatch: max abs err={err}, ref scale={scale}"
    print("KERNEL_OK")
</pallas_src>

<mosaic_0001>
module attributes {stable_mosaic.version = 11 : i64} {
  func.func @_probe(%arg0: i32, %arg1: memref<8x128xf32, #tpu.memory_space<vmem>>, %arg2: memref<8x128xf32, #tpu.memory_space<vmem>>) attributes {dimension_semantics = [#tpu.dimension_semantics<arbitrary>], iteration_bounds = array<i64: 2>, scalar_prefetch = 0 : i64, scratch_operands = 0 : i64, tpu.core_type = #tpu.core_type<tc>, window_params = [{pipeline_mode = #tpu.pipeline_mode<synchronous>, transform_indices = @transform_0, window_bounds = array<i64: 8, 128>}, {transform_indices = @transform_1, window_bounds = array<i64: 8, 128>}]} {
    %c0 = arith.constant 0 : index
    %c0_0 = arith.constant 0 : index
    %0 = vector.load %arg1[%c0, %c0_0] : memref<8x128xf32, #tpu.memory_space<vmem>>, vector<8x128xf32>
    %cst = arith.constant 1.000000e+00 : f32
    %1 = vector.broadcast %cst : f32 to vector<8x128xf32>
    %2 = arith.addf %0, %1 : vector<8x128xf32>
    %c0_1 = arith.constant 0 : index
    %c0_2 = arith.constant 0 : index
    %3 = vector.load %arg2[%c0_1, %c0_2] : memref<8x128xf32, #tpu.memory_space<vmem>>, vector<8x128xf32>
    tpu.vector_store %arg2[%c0_1, %c0_2], %2 {strides = array<i32>} : memref<8x128xf32, #tpu.memory_space<vmem>>, vector<8x128xf32>,
    return
  }
  func.func @transform_0(%arg0: i32) -> (i32, i32) {
    %c0_i32 = arith.constant 0 : i32
    %c0_i32_0 = arith.constant 0 : i32
    %c0_i32_1 = arith.constant 0 : i32
    return %c0_i32, %c0_i32_0 : i32, i32
  }
  func.func @transform_1(%arg0: i32) -> (i32, i32) {
    %c0_i32 = arith.constant 0 : i32
    %c0_i32_0 = arith.constant 0 : i32
    return %arg0, %c0_i32 : i32, i32
  }
}

module attributes {stable_mosaic.version = 11 : i64} {
  func.func @ln_qkv_kernel(%arg0: i32, %arg1: i32, %arg2: memref<128x256xf32, #tpu.memory_space<vmem>>, %arg3: memref<1x256xf32, #tpu.memory_space<vmem>>, %arg4: memref<1x256xf32, #tpu.memory_space<vmem>>, %arg5: memref<256x768xbf16, #tpu.memory_space<vmem>>, %arg6: memref<1x768xf32, #tpu.memory_space<vmem>>, %arg7: memref<128x768xbf16, #tpu.memory_space<vmem>>) attributes {dimension_semantics = [#tpu.dimension_semantics<parallel>, #tpu.dimension_semantics<parallel>], iteration_bounds = array<i64: 2, 1>, scalar_prefetch = 0 : i64, scratch_operands = 0 : i64, tpu.core_type = #tpu.core_type<tc>, window_params = [{transform_indices = @transform_0, window_bounds = array<i64: 128, 256>}, {pipeline_mode = #tpu.pipeline_mode<synchronous>, transform_indices = @transform_1, window_bounds = array<i64: 1, 256>}, {pipeline_mode = #tpu.pipeline_mode<synchronous>, transform_indices = @transform_2, window_bounds = array<i64: 1, 256>}, {transform_indices = @transform_3, window_bounds = array<i64: 256, 768>}, {transform_indices = @transform_4, window_bounds = array<i64: 1, 768>}, {transform_indices = @transform_5, window_bounds = array<i64: 128, 768>}]} {
    %c0 = arith.constant 0 : index
    %c0_0 = arith.constant 0 : index
    %0 = vector.load %arg2[%c0, %c0_0] : memref<128x256xf32, #tpu.memory_space<vmem>>, vector<128x256xf32>
    %cst = arith.constant dense<0.000000e+00> : vector<128xf32>
    %1 = vector.multi_reduction <add>, %0, %cst [1] : vector<128x256xf32> to vector<128xf32>
    %2 = vector.shape_cast %1 : vector<128xf32> to vector<128x1xf32>
    %cst_1 = arith.constant 2.560000e+02 : f32
    %3 = vector.broadcast %cst_1 : f32 to vector<128x1xf32>
    %4 = arith.divf %2, %3 : vector<128x1xf32>
    %5 = vector.broadcast %4 : vector<128x1xf32> to vector<128x256xf32>
    %6 = arith.subf %0, %5 : vector<128x256xf32>
    %7 = arith.mulf %6, %6 : vector<128x256xf32>
    %cst_2 = arith.constant dense<0.000000e+00> : vector<128xf32>
    %8 = vector.multi_reduction <add>, %7, %cst_2 [1] : vector<128x256xf32> to vector<128xf32>
    %9 = vector.shape_cast %8 : vector<128xf32> to vector<128x1xf32>
    %cst_3 = arith.constant 2.560000e+02 : f32
    %10 = vector.broadcast %cst_3 : f32 to vector<128x1xf32>
    %11 = arith.divf %9, %10 : vector<128x1xf32>
    %cst_4 = arith.constant 9.99999974E-6 : f32
    %12 = vector.broadcast %cst_4 : f32 to vector<128x1xf32>
    %13 = arith.addf %11, %12 : vector<128x1xf32>
    %14 = math.rsqrt %13 : vector<128x1xf32>
    %15 = vector.broadcast %14 : vector<128x1xf32> to vector<128x256xf32>
    %16 = arith.mulf %6, %15 : vector<128x256xf32>
    %c0_5 = arith.constant 0 : index
    %c0_6 = arith.constant 0 : index
    %17 = vector.load %arg3[%c0_5, %c0_6] : memref<1x256xf32, #tpu.memory_space<vmem>>, vector<1x256xf32>
    %18 = vector.broadcast %17 : vector<1x256xf32> to vector<128x256xf32>
    %19 = arith.mulf %16, %18 : vector<128x256xf32>
    %c0_7 = arith.constant 0 : index
    %c0_8 = arith.constant 0 : index
    %20 = vector.load %arg4[%c0_7, %c0_8] : memref<1x256xf32, #tpu.memory_space<vmem>>, vector<1x256xf32>
    %21 = vector.broadcast %20 : vector<1x256xf32> to vector<128x256xf32>
    %22 = arith.addf %19, %21 : vector<128x256xf32>
    %23 = arith.truncf %22 : vector<128x256xf32> to vector<128x256xbf16>
    %c0_9 = arith.constant 0 : index
    %c0_10 = arith.constant 0 : index
    %24 = vector.load %arg5[%c0_9, %c0_10] : memref<256x768xbf16, #tpu.memory_space<vmem>>, vector<256x768xbf16>
    %cst_11 = arith.constant dense<0.000000e+00> : vector<128x768xf32>
    %25 = tpu.matmul %23, %24, %cst_11 {dimension_numbers = #tpu.dot_dimension_numbers<[1], [0], [0], [1], [0, 0, 1, 1], [], []>} : vector<128x256xbf16>, vector<256x768xbf16>, vector<128x768xf32> -> vector<128x768xf32>
    %c0_12 = arith.constant 0 : index
    %c0_13 = arith.constant 0 : index
    %26 = vector.load %arg6[%c0_12, %c0_13] : memref<1x768xf32, #tpu.memory_space<vmem>>, vector<1x768xf32>
    %27 = vector.broadcast %26 : vector<1x768xf32> to vector<128x768xf32>
    %28 = arith.addf %25, %27 : vector<128x768xf32>
    %29 = arith.truncf %28 : vector<128x768xf32> to vector<128x768xbf16>
    %c0_14 = arith.constant 0 : index
    %c0_15 = arith.constant 0 : index
    %30 = vector.load %arg7[%c0_14, %c0_15] : memref<128x768xbf16, #tpu.memory_space<vmem>>, vector<128x768xbf16>
    tpu.vector_store %arg7[%c0_14, %c0_15], %29 {strides = array<i32>} : memref<128x768xbf16, #tpu.memory_space<vmem>>, vector<128x768xbf16>,
    return
  }
  func.func @transform_0(%arg0: i32, %arg1: i32) -> (i32, i32) {
    %c0_i32 = arith.constant 0 : i32
    %c0_i32_0 = arith.constant 0 : i32
    return %arg0, %c0_i32 : i32, i32
  }
  func.func @transform_1(%arg0: i32, %arg1: i32) -> (i32, i32) {
    %c0_i32 = arith.constant 0 : i32
    %c0_i32_0 = arith.constant 0 : i32
    %c0_i32_1 = arith.constant 0 : i32
    return %c0_i32, %c0_i32_0 : i32, i32
  }
  func.func @transform_2(%arg0: i32, %arg1: i32) -> (i32, i32) {
    %c0_i32 = arith.constant 0 : i32
    %c0_i32_0 = arith.constant 0 : i32
    %c0_i32_1 = arith.constant 0 : i32
    return %c0_i32, %c0_i32_0 : i32, i32
  }
  func.func @transform_3(%arg0: i32, %arg1: i32) -> (i32, i32) {
    %c0_i32 = arith.constant 0 : i32
    %c0_i32_0 = arith.constant 0 : i32
    return %c0_i32, %arg1 : i32, i32
  }
  func.func @transform_4(%arg0: i32, %arg1: i32) -> (i32, i32) {
    %c0_i32 = arith.constant 0 : i32
    %c0_i32_0 = arith.constant 0 : i32
    return %c0_i32, %arg1 : i32, i32
  }
  func.func @transform_5(%arg0: i32, %arg1: i32) -> (i32, i32) {
    %c0_i32 = arith.constant 0 : i32
    return %arg0, %arg1 : i32, i32
  }
}

</mosaic_0001>

<bundles_post_ra>
// kernel: tpu_custom_call.1
= control target key start
LH: loop header
LB: loop body
LE: loop exit
PB: predicated region body
PF: predicated region fallthrough
CT: control target
= control target key end

     0   :  { %6 = vsyncpa [#allocation3], 0  ;;  %s441_s0 = inlined_call_operand.hbm [shape: f32[8,128], index: 0, kind: input, shape index: {}]   ;;  %s442_s1 = inlined_call_operand.hbm [shape: f32[16,128], index: 1, kind: output, shape index: {}]  }
   0x1   :  { %7 = vsyncpa [#allocation4], 0 }
   0x2   :  { %9 = vsyncpa [#allocation4 + $0x1], 0  ;;  %s357_s6 = smov 0   ;;  %s359_s7 = smov 0  }
   0x3   :  { %s361_s8 = smov 0   ;;  %s363_s9 = smov 0  }
   0x4 LB: > { %s378_s10 = sadd.s32 4294967295, %s344_s9   ;;  %s188_s11 = sadd.s32 4294967294, %s344_s9   ;;  %s344_s9 = sphi %s363_s9, %s448_s9   ;;  %s340_s8 = sphi %s361_s8, %s447_s8   ;;  %s336_s7 = sphi %s359_s7, %s446_s7   ;;  %s332_s6 = sphi %s357_s6, %s445_s6  }
   0x5   : > { %s382_s12 = sadd.s32 1, %s344_s9   ;;  %s43_s13 = sadd.s32 1, %s340_s8 }
   0x6   : > { %s40_s14 = ssub.s32 %s344_s9, %s382_s12  ;;  %p53_p0 = scmp.ne.s32.totalorder %s340_s8, %s336_s7 }
   0x7   : > { %p41_p1 = scmp.eq.s32.totalorder %s40_s14, 0  ;;  %p54_p2 = scmp.eq.s32.totalorder %s378_s10, 1 }
   0x8   : > { %p59_p3 = scmp.ne.s32.totalorder %s336_s7, %s332_s6  ;;  %p60_p4 = scmp.eq.s32.totalorder %s188_s11, 1 }
   0x9   : > { %s393_s15 = scalar_select %p41_p1, %s340_s8, %s43_s13  }
   0xa   : > { %p395_p5 = por %p54_p2, %p53_p0  ;;  %p399_p6 = por %p60_p4, %p59_p3 }
   0xb   : > { %p189_p7 = scmp.ge.s32.totalorder %s344_s9, 1  ;;  %p67_p8 = scmp.lt.s32.totalorder %s344_s9, 3 }
   0xc   : > { %p212_p9 = scmp.eq.s32.totalorder %s378_s10, 0  ;;  %s79_s20 = sshll.u32 %s441_s0, 4  ;;  %s80_s20 = int_to_ptr.hbm [resolvable:$true] %s79_s20 }
   0xd   : > { %p68_p10 = pnand %p189_p7, %p67_p8  ;;  %s346_s21 = smov [#allocation2]  }
   0xe   : > { %s81_s22 = sshll.u32 %s346_s21, 4  ;;  %s82_s22 = int_to_ptr.vmem [resolvable:$true] %s81_s22 }
   0xf   : > { %p204_p11 = pneg %p68_p10  ;;  %94 = sbr.rel (%p68_p10) target bundleno = 37 (0x25), region = 24 }
  0x11   : > { %p205_p12 = pnand %p212_p9, %p204_p11 }
  0x13   : > { %207 = dma.hbm_to_vmem [thread:$0]  (!%p205_p12), %s80_s20, 128, %s82_s22, [#allocation3]  }
  0x14   : > { %323 = dma.done.wait (%p212_p9), [#allocation3], 128  }
  0x15   : > { %325 = vsyncadd (%p212_p9), [#allocation3], 4294967168  ;;  %s107_s23 = sand.u32 1, %s336_s7   ;;  %s195_s24 = sshll.u32 %s378_s10, 3  ;;  %v110_v0 = vld [vmem:[#allocation2] sm:$0xff] }
  0x16   : > { %s193_s25 = sshll.u32 %s107_s23, 3  ;;  %s124_s28 = scalar_lea.hbm %s442_s1, %s195_s24  ;;  %v111_v1 = vadd.f32 1.0, %v110_v0 }
  0x17   : > { %s109_s29 = scalar_lea.vmem [#allocation5], %s193_s25  ;;  %s128_s2 = sshll.u32 %s124_s28, 4  ;;  %s129_s2 = int_to_ptr.hbm [resolvable:$true] %s128_s2 }
  0x18   : > { %s126_s30 = sshll.u32 %s109_s29, 4  ;;  %112 = vst [vmem:[%s109_s29] sm:$0xff] %v111_v1  ;;  %s114_s3 = scalar_lea.sflag [#allocation4], %s107_s23  ;;  %s127_s30 = int_to_ptr.vmem [resolvable:$true] %s126_s30 }
  0x19   : > { %s292_s4 = sshra.s32 %s129_s2, 4  ;;  %s298_s13 = scalar_lea.hbm %s442_s1, 16  ;;  %s293_s4 = int_to_ptr.hbm [resolvable:$true] %s292_s4 }
  0x1a   : > { %s294_s5 = scalar_lea.hbm %s293_s4, 8  ;;  %p299_p2 = scmp.lt.s32.totalorder %s293_s4, %s442_s1 }
  0x1b   : > { %p295_p13 = scmp.ne.s32.totalorder %s293_s4, %s294_s5  ;;  %p300_p3 = scmp.lt.s32.totalorder %s298_s13, %s294_s5 }
  0x1d   : > { %p296_p0 = pnand %p295_p13, %p395_p5  ;;  %p301_p4 = por %p300_p3, %p299_p2 }
  0x1f   : > { %p297_p1 = pneg %p296_p0 }
  0x21   : > { %p302_p7 = pnand %p301_p4, %p297_p1 }
  0x23   : > { %305 = shalt.err (!%p302_p7)
}
  0x24   : > { %202 = dma.vmem_to_hbm [thread:$0]  (%p395_p5), %s127_s30, 128, %s129_s2, %s114_s3  }
  0x25 PF: > { %p214_p8 = scmp.ge.s32.totalorder %s344_s9, 2  ;;  %s140_s19 = sand.u32 1, %s332_s6  }
  0x26   : > { %s141_s20 = scalar_lea.sflag [#allocation4], %s140_s19 }
  0x27   : > { %p209_p9 = pnand %p214_p8, %p399_p6 }
  0x29   : > { %p210_p10 = pneg %p209_p9 }
  0x2b   : > { %327 = dma.done.wait (%p210_p10), %s141_s20, 128  }
  0x2c   : > { %329 = vsyncadd (%p210_p10), %s141_s20, 4294967168  ;;  %p12_p11 = scmp.ge.s32.totalorder %s382_s12, 4   ;;  %s445_s6 = smov %s336_s7 }
  0x2d   : > { %s446_s7 = smov %s340_s8  ;;  %s447_s8 = smov %s393_s15 }
  0x2e   : > { %s448_s9 = smov %s382_s12  ;;  %14 = sbr.rel (!%p12_p11) target bundleno = 4 (0x4), region = 61 }
  0x33   :  { %147 = vsyncpa [#allocation3], 1 }
  0x34   :  { %149 = vsyncpa [#allocation3 + $0x1], 1 }
  0x35   :  { %150 = vsyncpa [#allocation4], 1 }
  0x36   :  { %152 = vsyncpa [#allocation4 + $0x1], 1 }

// kernel: tpu_custom_call.1
= control target key start
LH: loop header
LB: loop body
LE: loop exit
PB: predicated region body
PF: predicated region fallthrough
CT: control target
= control target key end

     0   :  { %s4270_s0 = inlined_call_operand.hbm [shape: f32[256,256], index: 0, kind: input, shape index: {}]   ;;  %s4271_s1 = inlined_call_operand.hbm [shape: f32[1,256], index: 1, kind: input, shape index: {}]   ;;  %s4272_s2 = inlined_call_operand.hbm [shape: f32[1,256], index: 2, kind: input, shape index: {}]   ;;  %s4273_s3 = inlined_call_operand.hbm [shape: bf16[256,768], index: 3, kind: input, shape index: {}]   ;;  %s4274_s4 = inlined_call_operand.hbm [shape: f32[1,768], index: 4, kind: input, shape index: {}]   ;;  %s4275_s5 = inlined_call_operand.hbm [shape: bf16[256,768], index: 5, kind: output, shape index: {}]  }
   0x1   :  { %4276 = sst [smem:[#allocation16_spill]] %s4271_s1 }
   0x2   :  { %4277 = sst [smem:[#allocation17_spill]] %s4272_s2 }
   0x3   :  { %4278 = sst [smem:[#allocation18_spill]] %s4273_s3 }
   0x4   :  { %10 = vsyncpa [#allocation3], 0 }
   0x5   :  { %12 = vsyncpa [#allocation3 + $0x1], 0 }
   0x6   :  { %13 = vsyncpa [#allocation6], 0 }
   0x7   :  { %14 = vsyncpa [#allocation9], 0 }
   0x8   :  { %15 = vsyncpa [#allocation4], 0 }
   0x9   :  { %17 = vsyncpa [#allocation4 + $0x1], 0  ;;  %s3225_s18 = smov 0   ;;  %s3227_s19 = smov 0  }
   0xa   :  { %s3229_s20 = smov 0   ;;  %s3231_s21 = smov 0  }
   0xb   :  { %s3233_s22 = smov 0   ;;  %s3235_s23 = smov 0  }
   0xc LB: > { %s2290_s24 = sadd.s32 4294967295, %s3182_s23   ;;  %s2291_s25 = sadd.s32 4294967294, %s3182_s23   ;;  %s3182_s23 = sphi %s3235_s23, %s23_s23   ;;  %s3178_s22 = sphi %s3233_s22, %s4296_s22   ;;  %s3174_s21 = sphi %s3231_s21, %s4295_s21   ;;  %s3170_s20 = sphi %s3229_s20, %s4294_s20   ;;  %s3166_s19 = sphi %s3227_s19, %s4293_s19   ;;  %s3162_s18 = sphi %s3225_s18, %s4292_s18  }
   0xd   : > { %p55_p0 = scmp.ne.s32.totalorder %s3166_s19, %s3162_s18  ;;  %p3259_p1 = scmp.eq.s32.totalorder %s2290_s24, 0 }
   0xe   : > { %p3263_p2 = scmp.eq.s32.totalorder %s2290_s24, 1  ;;  %p181_p3 = scmp.eq.s32.totalorder %s2291_s25, 1 }
   0xf   : > { %p3269_p4 = por %p3259_p1, %p55_p0  ;;  %p2292_p5 = scmp.ge.s32.totalorder %s3182_s23, 1 }
  0x10   : > { %p3274_p6 = por %p181_p3, %p55_p0  ;;  %p188_p7 = scmp.lt.s32.totalorder %s3182_s23, 3 }
  0x11   : > { %s4283_s1 = sld [smem:[#allocation16_spill]]  ;;  %p2297_p9 = scmp.ge.s32.totalorder %s3182_s23, 2 }
  0x12   : > { %p3282_p8 = pnand %p2292_p5, %p188_p7  ;;  %s3184_s9 = smov [#allocation5]  }
  0x13   : > { %s202_s10 = sshll.u32 %s3184_s9, 4  ;;  %s4285_s3 = sld [smem:[#allocation18_spill]]  ;;  %s203_s10 = int_to_ptr.vmem [resolvable:$true] %s202_s10 }
  0x14   : > { %p2817_p10 = pneg %p3282_p8  ;;  %s3185_s15 = smov [#allocation8]  }
  0x15   : > { %s228_s16 = sshll.u32 %s3185_s15, 4  ;;  %s3186_s17 = smov 384   ;;  %s229_s16 = int_to_ptr.vmem [resolvable:$true] %s228_s16 }
  0x16   : > { %p3294_p11 = pnand %p2817_p10, %p3259_p1  ;;  %s3187_s24 = smov 24  }
  0x17   : > { %s200_s7 = sshll.u32 %s4283_s1, 4  ;;  %s4287_s2 = sld [smem:[#allocation17_spill]]  ;;  %s201_s7 = int_to_ptr.hbm [resolvable:$true] %s200_s7 }
  0x18   : > { %2820 = dma.hbm_to_vmem [thread:$0]  (!%p3294_p11), %s201_s7, 32, %s203_s10, [#allocation6]  }
  0x19   : > { %s226_s13 = sshll.u32 %s4285_s3, 4  ;;  %s3188_s9 = smov [#allocation7]   ;;  %s227_s13 = int_to_ptr.hbm [resolvable:$true] %s226_s13 }
  0x1a   : > { %2826 = dma.hbm_to_vmem [thread:$0]  (!%p3294_p11), %s227_s13, 12288, %s229_s16, [#allocation9], %s3186_s17, %s3186_s17, %s3187_s24  }
  0x1b   : > { %s214_s11 = sshll.u32 %s3188_s9, 4  ;;  %s243_s12 = sshll.u32 %s4274_s4, 4  ;;  %s215_s11 = int_to_ptr.vmem [resolvable:$true] %s214_s11  ;;  %s244_s12 = int_to_ptr.hbm [resolvable:$true] %s243_s12 }
  0x1c   : > { %s3189_s13 = smov [#allocation10]   ;;  %s35_s16 = sadd.s32 1, %s3178_s22 }
  0x1d   : > { %s212_s6 = sshll.u32 %s4287_s2, 4  ;;  %s245_s15 = sshll.u32 %s3189_s13, 4  ;;  %s213_s6 = int_to_ptr.hbm [resolvable:$true] %s212_s6  ;;  %s246_s15 = int_to_ptr.vmem [resolvable:$true] %s245_s15 }
  0x1e   : > { %2823 = dma.hbm_to_vmem [thread:$0]  (!%p3294_p11), %s213_s6, 32, %s215_s11, [#allocation6]  }
  0x1f   : > { %2829 = dma.hbm_to_vmem [thread:$0]  (!%p3294_p11), %s244_s12, 96, %s246_s15, [#allocation9]  }
  0x20   : > { %s42_s17 = sadd.s32 1, %s3170_s20  ;;  %p37_p12 = scmp.ge.s32.totalorder %s35_s16, 2 }
  0x21   : > { %p49_p13 = scmp.ne.s32.totalorder %s3170_s20, %s3166_s19  ;;  %p50_p0 = scmp.eq.s32.totalorder %s3182_s23, 0 }
  0x22   : > { %p2842_p3 = scmp.lt.s32.totalorder %s3182_s23, 2  ;;  %s4298_s16 = smov (%p37_p12, %s35_s16), 0 }
  0x23   : > { %p3320_p5 = por %p50_p0, %p49_p13  ;;  %p3326_p7 = por %p3263_p2, %p49_p13 }
  0x24   : > { %s39_s25 = ssub.s32 %s3178_s22, %s4298_s16  ;;  %s256_s30 = sand.u32 1, %s3170_s20  }
  0x25   : > { %p40_p10 = scmp.eq.s32.totalorder %s39_s25, 0  ;;  %s2298_s6 = sshll.u32 %s256_s30, 8 }
  0x26   : > { %s2698_s9 = sshll.u32 %s3178_s22, 8  ;;  %s260_s15 = scalar_lea.vmem [#allocation2], %s2298_s6 }
  0x27   : > { %s3335_s11 = scalar_select %p40_p10, %s3170_s20, %s42_s17  }
  0x28   : > { %s266_s12 = scalar_lea.hbm %s4270_s0, %s2698_s9  ;;  %s269_s1 = sshll.u32 %s260_s15, 4  ;;  %s270_s1 = int_to_ptr.vmem [resolvable:$true] %s269_s1 }
  0x29   : > { %s267_s13 = sshll.u32 %s266_s12, 4  ;;  %p2831_p2 = pnand %p2842_p3, %p3320_p5  ;;  %s268_s13 = int_to_ptr.hbm [resolvable:$true] %s267_s13 }
  0x2a   : > { %s257_s27 = scalar_lea.sflag [#allocation3], %s256_s30  ;;  %s3190_s2 = smov 256  }
  0x2b   : > { %s3191_s3 = smov 16   ;;  %281 = sbr.rel (%p3282_p8) target bundleno = 925 (0x39d), region = 40 }
  0x2c   : > { %2833 = dma.hbm_to_vmem [thread:$0]  (!%p2831_p2), %s268_s13, 4096, %s270_s1, %s257_s27, %s3190_s2, %s3190_s2, %s3191_s3  }
  0x2d   : > { %s3347_s17 = sand.u32 (!%p3282_p8), 1, %s3166_s19  }
  0x2e   : > { %s2303_s25 = sshll.u32 (!%p3282_p8), %s3347_s17, 8  ;;  %s284_s6 = scalar_lea.sflag (!%p3282_p8), [#allocation3], %s3347_s17 }
  0x2f   : > { %s3351_s9 = scalar_lea.vmem (!%p3282_p8), [#allocation2], %s2303_s25 }
  0x30   : > { %3145 = dma.done.wait (%p3269_p4), %s284_s6, 4096  }
  0x31   : > { %3147 = vsyncadd (%p3269_p4), %s284_s6, 4294963200 }
  0x32   : > { %3149 = dma.done.wait (%p3259_p1), [#allocation6], 64  }
  0x33   : > { %3151 = vsyncadd (%p3259_p1), [#allocation6], 4294967232 }
  0x34   : > { %3153 = dma.done.wait (%p3259_p1), [#allocation9], 12384  }
  0x35   : > { %3155 = vsyncadd (%p3259_p1), [#allocation9], 4294954912  ;;  %v3366_v0 = vld [vmem:[%s3351_s9 + $0x20] sm:$0xff]  ;;  %v3369_v1 = vld [vmem:[%s3351_s9 + $0x28] sm:$0xff]  ;;  %v3192_v27 = vmov 256.0   ;;  %s2795_s1 = smul.u32 384, %s3347_s17 }
  0x36   : > { %v340_v2 = vld [vmem:[%s3351_s9] sm:$0xff]  ;;  %v378_v3 = vadd.f32 %v3369_v1, %v3366_v0  ;;  %v341_v4 = vld [vmem:[%s3351_s9 + $0x8] sm:$0xff]  ;;  %v346_v8 = vld [vmem:[%s3351_s9 + $0x30] sm:$0xff]  ;;  %2907 = vrcp.f32 %v3192_v27  ;;  %s2796_s3 = smul.u32 384, %s3174_s21  ;;  %s2146_s21 = scalar_lea.sflag [#allocation4], %s3347_s17 }
  0x37   : > { %v372_v5 = vadd.f32 %v341_v4, %v340_v2  ;;  %v348_v6 = vld [vmem:[%s3351_s9 + $0x40] sm:$0xff]  ;;  %v349_v7 = vld [vmem:[%s3351_s9 + $0x48] sm:$0xff]  ;;  %v347_v9 = vld [vmem:[%s3351_s9 + $0x38] sm:$0xff]  ;;  %s3904_s2 = scalar_lea.vmem [#allocation11], %s2795_s1  ;;  %s3112_s15 = scalar_lea.hbm %s4275_s5, 768 }
  0x38   : > { %379 = vadd.xlane.f32.xlu1 %v378_v3  ;;  %v384_v10 = vadd.f32 %v349_v7, %v348_v6  ;;  %v342_v11 = vld [vmem:[%s3351_s9 + $0x10] sm:$0xff]  ;;  %v343_v12 = vld [vmem:[%s3351_s9 + $0x18] sm:$0xff]  ;;  %v381_v13 = vadd.f32 %v347_v9, %v346_v8  ;;  %v3396_v20 = vld [vmem:[%s3351_s9 + $0x60] sm:$0xff]  ;;  %s2160_s8 = scalar_lea.hbm %s4275_s5, %s2796_s3  ;;  %s2161_s24 = sshll.u32 %s3904_s2, 4  ;;  %s2162_s24 = int_to_ptr.vmem [resolvable:$true] %s2161_s24 }
  0x39   : > { %373 = vadd.xlane.f32.xlu0 %v372_v5  ;;  %v3382_v14 = vld [vmem:[%s3351_s9 + $0x50] sm:$0xff]  ;;  %v3385_v15 = vld [vmem:[%s3351_s9 + $0x58] sm:$0xff]  ;;  %v375_v16 = vadd.f32 %v343_v12, %v342_v11  ;;  %v3399_v21 = vld [vmem:[%s3351_s9 + $0x68] sm:$0xff]  ;;  %s2163_s30 = sshll.u32 %s2160_s8, 4  ;;  %s2164_s30 = int_to_ptr.hbm [resolvable:$true] %s2163_s30 }
  0x3a   : > { %385 = vadd.xlane.f32.xlu2 %v384_v10  ;;  %v387_v17 = vadd.f32 %v3385_v15, %v3382_v14  ;;  %v3390_v18 = vld [vmem:[%s3351_s9 + $0x70] sm:$0xff]  ;;  %v3393_v19 = vld [vmem:[%s3351_s9 + $0x78] sm:$0xff]  ;;  %v390_v23 = vadd.f32 %v3399_v21, %v3396_v20  ;;  %v3406_v24 = vld [vmem:[%s3351_s9 + $0x80] sm:$0xff]  ;;  %s3106_s7 = sshra.s32 %s2164_s30, 4  ;;  %s3107_s7 = int_to_ptr.hbm [resolvable:$true] %s3106_s7 }
  0x3b   : > { %v393_v22 = vadd.f32 %v3393_v19, %v3390_v18  ;;  %v3409_v25 = vld [vmem:[%s3351_s9 + $0x88] sm:$0xff]  ;;  %v3427_v47 = vld [vmem:[%s3351_s9 + $0x90] sm:$0xff]  ;;  %v3430_v48 = vld [vmem:[%s3351_s9 + $0x98] sm:$0xff]  ;;  %s3108_s10 = scalar_lea.hbm %s3107_s7, 384  ;;  %p3113_p11 = scmp.lt.s32.totalorder %s3107_s7, %s4275_s5 }
  0x3c   : > { %v396_v26 = vadd.f32 %v3409_v25, %v3406_v24  ;;  %v2908_v28 = vpop.eup %2907  ;;  %v399_v55 = vadd.f32 %v3430_v48, %v3427_v47  ;;  %v3497_v27 = vld [vmem:[%s3351_s9 + $0xb0] sm:$0xff]  ;;  %p3109_p1 = scmp.ne.s32.totalorder %s3107_s7, %s3108_s10  ;;  %p3114_p12 = scmp.lt.s32.totalorder %s3112_s15, %s3108_s10 }
  0x3d   : > { %v421_v29 = vmul.f32 256.0, %v2908_v28  ;;  %vm425_vm0 = vweird.f32 %v2908_v28 }
  0x3e   : > { %p3110_p4 = pnand %p3109_p1, %p3326_p7  ;;  %p3115_p13 = por %p3114_p12, %p3113_p11 }
  0x3f   : > { %v422_v30 = vsub.f32 1.0, %v421_v29 }
  0x40   : > { %382 = vadd.xlane.f32.xlu1 %v381_v13  ;;  %p3111_p8 = pneg %p3110_p4 }
  0x41   : > { %376 = vadd.xlane.f32.xlu0 %v375_v16  ;;  %v423_v31 = vmul.f32 %v2908_v28, %v422_v30 }
  0x42   : > { %388 = vadd.xlane.f32.xlu2 %v387_v17  ;;  %p3116_p0 = pnand %p3115_p13, %p3111_p8 }
  0x43   : > { %v424_v32 = vadd.f32 %v2908_v28, %v423_v31 }
  0x45   : > { %v3413_v33 = vsel %vm425_vm0, %v2908_v28, %v424_v32  ;;  %v3500_v28 = vld [vmem:[%s3351_s9 + $0xb8] sm:$0xff] }
  0x48   : > { %394 = vadd.xlane.f32.xlu1 %v393_v22 }
  0x49   : > { %391 = vadd.xlane.f32.xlu0 %v390_v23  ;;  %v3487_v23 = vld [vmem:[%s3351_s9 + $0xd0] sm:$0xff] }
  0x50   : > { %397 = vadd.xlane.f32.xlu1 %v396_v26  ;;  %v3490_v26 = vld [vmem:[%s3351_s9 + $0xd8] sm:$0xff] }
  0x51   : > { %v411_v29 = vadd.f32 %v3490_v26, %v3487_v23 }
  0xab   : > { %v380_v34 = vpop.xlane.xlu1 %379 }
  0xac   : > { %v374_v35 = vpop.xlane.xlu0 %373  ;;  %v429_v49 = vmul.f32 %v3413_v33, %v380_v34 }
  0xad   : > { %v427_v36 = vmul.f32 %v3413_v33, %v374_v35  ;;  %v386_v39 = vpop.xlane.xlu2 %385  ;;  %v405_v35 = vadd.f32 %v3500_v28, %v3497_v27 }
  0xae   : > { %v431_v46 = vmul.f32 %v3413_v33, %v386_v39  ;;  %v3453_v60 = vsub.f32 %v3366_v0, %v429_v49  ;;  %v3456_v61 = vsub.f32 %v3369_v1, %v429_v49  ;;  %v3514_v39 = vld [vmem:[%s3351_s9 + $0xe0] sm:$0xff] }
  0xaf   : > { %v3416_v37 = vsub.f32 %v340_v2, %v427_v36  ;;  %v3418_v38 = vsub.f32 %v341_v4, %v427_v36 }
  0xb0   : > { %v3444_v56 = vsub.f32 %v348_v6, %v431_v46  ;;  %v3446_v57 = vsub.f32 %v349_v7, %v431_v46  ;;  %v479_v6 = vmul.f32 %v3453_v60, %v3453_v60  ;;  %v480_v7 = vmul.f32 %v3456_v61, %v3456_v61 }
  0xb1   : > { %v475_v40 = vmul.f32 %v3416_v37, %v3416_v37  ;;  %v476_v41 = vmul.f32 %v3418_v38, %v3418_v38 }
  0xb2   : > { %v483_v5 = vmul.f32 %v3444_v56, %v3444_v56  ;;  %v484_v0 = vmul.f32 %v3446_v57, %v3446_v57  ;;  %v513_v16 = vadd.f32 %v480_v7, %v479_v6  ;;  %v2670_v6 = vld [vmem:[#allocation8 + $0x2d0] sm:$0xf] }
  0xb3   : > { %v383_v42 = vpop.xlane.xlu1 %382  ;;  %v507_v43 = vadd.f32 %v476_v41, %v475_v40  ;;  %v3517_v40 = vld [vmem:[%s3351_s9 + $0xe8] sm:$0xff]  ;;  %v3524_v41 = vld [vmem:[%s3351_s9 + $0xc0] sm:$0xff] }
  0xb4   : > { %v430_v44 = vmul.f32 %v3413_v33, %v383_v42  ;;  %v377_v45 = vpop.xlane.xlu0 %376  ;;  %v519_v10 = vadd.f32 %v484_v0, %v483_v5  ;;  %v3527_v42 = vld [vmem:[%s3351_s9 + $0xc8] sm:$0xff] }
  0xb5   : > { %v428_v50 = vmul.f32 %v3413_v33, %v377_v45  ;;  %508 = vadd.xlane.f32.xlu2 %v507_v43  ;;  %v389_v3 = vpop.xlane.xlu2 %388  ;;  %v414_v43 = vadd.f32 %v3517_v40, %v3514_v39  ;;  %v408_v46 = vadd.f32 %v3527_v42, %v3524_v41 }
  0xb6   : > { %v3434_v51 = vsub.f32 %v346_v8, %v430_v44  ;;  %v3436_v52 = vsub.f32 %v347_v9, %v430_v44  ;;  %v432_v1 = vmul.f32 %v3413_v33, %v389_v3  ;;  %v3472_v8 = vld [vmem:[%s3351_s9 + $0xa0] sm:$0xff]  ;;  %v3475_v9 = vld [vmem:[%s3351_s9 + $0xa8] sm:$0xff] }
  0xb7   : > { %v3438_v53 = vsub.f32 %v342_v11, %v428_v50  ;;  %v3440_v54 = vsub.f32 %v343_v12, %v428_v50  ;;  %v402_v13 = vadd.f32 %v3475_v9, %v3472_v8 }
  0xb8   : > { %v481_v58 = vmul.f32 %v3434_v51, %v3434_v51  ;;  %v482_v59 = vmul.f32 %v3436_v52, %v3436_v52  ;;  %v3478_v11 = vsub.f32 %v3382_v14, %v432_v1  ;;  %v3481_v12 = vsub.f32 %v3385_v15, %v432_v1  ;;  %v2478_v1 = vld [vmem:[#allocation8 + $0x150] sm:$0xf] }
  0xb9   : > { %v477_v62 = vmul.f32 %v3438_v53, %v3438_v53  ;;  %v478_v63 = vmul.f32 %v3440_v54, %v3440_v54 }
  0xba   : > { %v516_v2 = vadd.f32 %v482_v59, %v481_v58  ;;  %v485_v14 = vmul.f32 %v3478_v11, %v3478_v11  ;;  %v486_v15 = vmul.f32 %v3481_v12, %v3481_v12  ;;  %v3545_v59 = vld [vmem:[%s3351_s9 + $0xf0] sm:$0xff] }
  0xbb   : > { %v510_v4 = vadd.f32 %v478_v63, %v477_v62  ;;  %v395_v30 = vpop.xlane.xlu1 %394 }
  0xbc   : > { %517 = vadd.xlane.f32.xlu1 %v516_v2  ;;  %v392_v17 = vpop.xlane.xlu0 %391  ;;  %v522_v34 = vadd.f32 %v486_v15, %v485_v14  ;;  %v434_v36 = vmul.f32 %v3413_v33, %v395_v30  ;;  %v2672_v14 = vld [vmem:[#allocation8 + $0x2e8] sm:$0xf0]  ;;  %v2738_v30 = vld [vmem:[#allocation8 + $0x134] sm:$0xf0] }
  0xbd   : > { %400 = vadd.xlane.f32.xlu2 %v399_v55  ;;  %511 = vadd.xlane.f32.xlu0 %v510_v4  ;;  %v433_v22 = vmul.f32 %v3413_v33, %v392_v17 }
  0xbe   : > { %v3532_v44 = vsub.f32 %v3390_v18, %v434_v36  ;;  %v3535_v45 = vsub.f32 %v3393_v19, %v434_v36  ;;  %v3548_v19 = vld [vmem:[%s3351_s9 + $0xf8] sm:$0xff] }
  0xbf   : > { %v3505_v31 = vsub.f32 %v3396_v20, %v433_v22  ;;  %v3508_v32 = vsub.f32 %v3399_v21, %v433_v22  ;;  %v417_v3 = vadd.f32 %v3548_v19, %v3545_v59  ;;  %v2789_v22 = vld [vmem:[#allocation8 + $0x2d4] sm:$0xf]  ;;  %v2786_v36 = vld [vmem:[#allocation8 + $0x2b4] sm:$0xf0] }
  0xc0   : > { %v489_v58 = vmul.f32 %v3532_v44, %v3532_v44  ;;  %v490_v18 = vmul.f32 %v3535_v45, %v3535_v45  ;;  %v2675_v15 = vor.u32 %v2789_v22, %v2672_v14  ;;  %v2774_v22 = vld [vmem:[#allocation8 + $0x254] sm:$0xf0]  ;;  %v2723_v14 = vld [vmem:[#allocation8 + $0xc4] sm:$0xf] }
  0xc1   : > { %v487_v20 = vmul.f32 %v3505_v31, %v3505_v31  ;;  %v488_v21 = vmul.f32 %v3508_v32, %v3508_v32 }
  0xc2   : > { %v528_v2 = vadd.f32 %v490_v18, %v489_v58  ;;  %1608 = vmatpush.bf16.msra.mxu3 %v2675_v15  ;;  %v2430_v58 = vld [vmem:[#allocation8 + $0xf0] sm:$0xf]  ;;  %v2732_v18 = vld [vmem:[#allocation8 + $0x104] sm:$0xf0]  ;;  %v2408_v15 = vld [vmem:[#allocation8 + $0xd8] sm:$0xf0] }
  0xc3   : > { %v525_v49 = vadd.f32 %v488_v21, %v487_v20  ;;  %v398_v50 = vpop.xlane.xlu1 %397  ;;  %v2735_v20 = vld [vmem:[#allocation8 + $0x124] sm:$0xf]  ;;  %v2456_v21 = vld [vmem:[#allocation8 + $0x138] sm:$0xf0] }
  0xc4   : > { %520 = vadd.xlane.f32.xlu1 %v519_v10  ;;  %v435_v55 = vmul.f32 %v3413_v33, %v398_v50  ;;  %v2741_v10 = vld [vmem:[#allocation8 + $0x154] sm:$0xf]  ;;  %v2648_v50 = vld [vmem:[#allocation8 + $0x2b8] sm:$0xf0] }
  0xc5   : > { %403 = vadd.xlane.f32.xlu2 %v402_v13  ;;  %514 = vadd.xlane.f32.xlu0 %v513_v16  ;;  %v2480_v13 = vld [vmem:[#allocation8 + $0x168] sm:$0xf0] }
  0xc6   : > { %v3551_v62 = vsub.f32 %v3406_v24, %v435_v55  ;;  %v3554_v63 = vsub.f32 %v3409_v25, %v435_v55  ;;  %v2744_v24 = vld [vmem:[#allocation8 + $0x164] sm:$0xf0]  ;;  %v2483_v17 = vor.u32 %v2741_v10, %v2480_v13  ;;  %v2406_v10 = vld [vmem:[#allocation8 + $0xc0] sm:$0xf]  ;;  %v2726_v13 = vld [vmem:[#allocation8 + $0xd4] sm:$0xf0] }
  0xc7   : > { %v2479_v7 = vor.u32 %v2744_v24, %v2478_v1  ;;  %v2792_v25 = vld [vmem:[#allocation8 + $0x2e4] sm:$0xf0] }
  0xc8   : > { %v491_v4 = vmul.f32 %v3551_v62, %v3551_v62  ;;  %v492_v5 = vmul.f32 %v3554_v63, %v3554_v63  ;;  %v2671_v16 = vor.u32 %v2792_v25, %v2670_v6  ;;  %1559 = vmatpush.bf16.msra.mxu2 %v2483_v17  ;;  %v2777_v6 = vld [vmem:[#allocation8 + $0x274] sm:$0xf]  ;;  %v2407_v17 = vor.u32 %v2726_v13, %v2406_v10 }
  0xc9   : > { %1461 = vmatpush.bf16.msra.mxu0 %v2479_v7  ;;  %v2624_v7 = vld [vmem:[#allocation8 + $0x288] sm:$0xf0] }
  0xca   : > { %v531_v0 = vadd.f32 %v492_v5, %v491_v4  ;;  %1510 = vmatpush.bf16.msra.mxu1 %v2671_v16  ;;  %v2780_v4 = vld [vmem:[#allocation8 + $0x284] sm:$0xf0]  ;;  %v2729_v5 = vld [vmem:[#allocation8 + $0xf4] sm:$0xf]  ;;  %v2627_v25 = vor.u32 %v2777_v6, %v2624_v7  ;;  %v2598_v16 = vld [vmem:[#allocation8 + $0x240] sm:$0xf] }
  0xcb   : > { %v2762_v6 = vld [vmem:[#allocation8 + $0x1f4] sm:$0xf0]  ;;  %v2711_v7 = vld [vmem:[#allocation8 + $0x64] sm:$0xf] }
  0xcc   : > { %412 = vadd.xlane.f32.xlu1 %v411_v29  ;;  %v2454_v29 = vld [vmem:[#allocation8 + $0x120] sm:$0xf] }
  0xcd   : > { %523 = vadd.xlane.f32.xlu2 %v522_v34  ;;  %406 = vadd.xlane.f32.xlu0 %v405_v35  ;;  %v2646_v34 = vld [vmem:[#allocation8 + $0x2a0] sm:$0xf]  ;;  %v2455_v35 = vor.u32 %v2738_v30, %v2454_v29  ;;  %v2599_v29 = vor.u32 %v2774_v22, %v2598_v16  ;;  %v2411_v30 = vor.u32 %v2723_v14, %v2408_v15  ;;  %v2759_v16 = vld [vmem:[#allocation8 + $0x1e4] sm:$0xf]  ;;  %v2334_v15 = vld [vmem:[#allocation8 + $0x30] sm:$0xf] }
  0xcf   : > { %1462 = vmatpush.bf16.msra.mxu0 %v2455_v35  ;;  %v2600_v35 = vld [vmem:[#allocation8 + $0x258] sm:$0xf0] }
  0xd4   : > { %415 = vadd.xlane.f32.xlu1 %v414_v43  ;;  %v2647_v43 = vor.u32 %v2786_v36, %v2646_v34  ;;  %v2771_v34 = vld [vmem:[#allocation8 + $0x244] sm:$0xf] }
  0xd5   : > { %409 = vadd.xlane.f32.xlu0 %v408_v46  ;;  %526 = vadd.xlane.f32.xlu2 %v525_v49  ;;  %v2459_v46 = vor.u32 %v2735_v20, %v2456_v21  ;;  %v2783_v49 = vld [vmem:[#allocation8 + $0x2a4] sm:$0xf]  ;;  %v2603_v36 = vor.u32 %v2771_v34, %v2600_v35  ;;  %v2382_v20 = vld [vmem:[#allocation8 + $0x90] sm:$0xf]  ;;  %v2720_v21 = vld [vmem:[#allocation8 + $0xa4] sm:$0xf0] }
  0xd6   : > { %v2651_v55 = vor.u32 %v2783_v49, %v2648_v50  ;;  %1511 = vmatpush.bf16.msra.mxu1 %v2647_v43  ;;  %v2574_v43 = vld [vmem:[#allocation8 + $0x210] sm:$0xf]  ;;  %v2768_v49 = vld [vmem:[#allocation8 + $0x224] sm:$0xf0]  ;;  %v2717_v50 = vld [vmem:[#allocation8 + $0x94] sm:$0xf] }
  0xd7   : > { %1560 = vmatpush.bf16.msra.mxu2 %v2459_v46  ;;  %v2383_v46 = vor.u32 %v2720_v21, %v2382_v20  ;;  %v2705_v20 = vld [vmem:[#allocation8 + $0x34] sm:$0xf]  ;;  %v2336_v21 = vld [vmem:[#allocation8 + $0x48] sm:$0xf0] }
  0xd8   : > { %1609 = vmatpush.bf16.msra.mxu3 %v2651_v55  ;;  %v2384_v55 = vld [vmem:[#allocation8 + $0xa8] sm:$0xf0] }
  0xdc   : > { %1610 = vmatpush.bf16.msra.mxu3 %v2627_v25  ;;  %v2360_v25 = vld [vmem:[#allocation8 + $0x78] sm:$0xf0] }
  0xdd   : > { %529 = vadd.xlane.f32.xlu0 %v528_v2  ;;  %418 = vadd.xlane.f32.xlu2 %v417_v3  ;;  %v2622_v2 = vld [vmem:[#allocation8 + $0x270] sm:$0xf]  ;;  %v2431_v3 = vor.u32 %v2732_v18, %v2430_v58  ;;  %v2575_v58 = vor.u32 %v2768_v49, %v2574_v43  ;;  %v2387_v18 = vor.u32 %v2717_v50, %v2384_v55  ;;  %v2753_v49 = vld [vmem:[#allocation8 + $0x1b4] sm:$0xf]  ;;  %v2528_v50 = vld [vmem:[#allocation8 + $0x1c8] sm:$0xf0] }
  0xde   : > { %v2623_v1 = vor.u32 %v2780_v4, %v2622_v2  ;;  %v2765_v2 = vld [vmem:[#allocation8 + $0x214] sm:$0xf]  ;;  %v2363_v13 = vor.u32 %v2711_v7, %v2360_v25 }
  0xdf   : > { %1463 = vmatpush.bf16.msra.mxu0 %v2431_v3  ;;  %v2576_v3 = vld [vmem:[#allocation8 + $0x228] sm:$0xf0] }
  0xe0   : > { %1512 = vmatpush.bf16.msra.mxu1 %v2623_v1  ;;  %1611 = vmatpush.bf16.msra.mxu3 %v2603_v36  ;;  %v2579_v4 = vor.u32 %v2765_v2, %v2576_v3  ;;  %v2550_v1 = vld [vmem:[#allocation8 + $0x1e0] sm:$0xf]  ;;  %v2756_v36 = vld [vmem:[#allocation8 + $0x1c4] sm:$0xf0] }
  0xe1   : > { %v2551_v10 = vor.u32 %v2762_v6, %v2550_v1 }
  0xe3   : > { %1464 = vmatpush.bf16.msra.mxu0 %v2407_v17  ;;  %v2552_v17 = vld [vmem:[#allocation8 + $0x1f8] sm:$0xf0] }
  0xe4   : > { %1513 = vmatpush.bf16.msra.mxu1 %v2599_v29  ;;  %1612 = vmatpush.bf16.msra.mxu3 %v2579_v4  ;;  %v2555_v22 = vor.u32 %v2759_v16, %v2552_v17  ;;  %v2708_v29 = vld [vmem:[#allocation8 + $0x44] sm:$0xf0] }
  0xe5   : > { %532 = vadd.xlane.f32.xlu0 %v531_v0  ;;  %v2432_v0 = vld [vmem:[#allocation8 + $0x108] sm:$0xf0]  ;;  %v2335_v35 = vor.u32 %v2708_v29, %v2334_v15 }
  0xe6   : > { %v2435_v24 = vor.u32 %v2729_v5, %v2432_v0  ;;  %v2358_v5 = vld [vmem:[#allocation8 + $0x60] sm:$0xf]  ;;  %v2714_v0 = vld [vmem:[#allocation8 + $0x74] sm:$0xf0] }
  0xe7   : > { %1465 = vmatpush.bf16.msra.mxu0 %v2383_v46  ;;  %v2339_v46 = vor.u32 %v2705_v20, %v2336_v21 }
  0xe8   : > { %1561 = vmatpush.bf16.msra.mxu2 %v2435_v24  ;;  %1514 = vmatpush.bf16.msra.mxu1 %v2575_v58  ;;  %v2359_v24 = vor.u32 %v2714_v0, %v2358_v5  ;;  %v2531_v58 = vor.u32 %v2753_v49, %v2528_v50  ;;  %v2747_v50 = vld [vmem:[#allocation8 + $0x184] sm:$0xf] }
  0xe9   : > { %1613 = vmatpush.bf16.msra.mxu3 %v2555_v22  ;;  %v2702_v22 = vld [vmem:[#allocation8 + $0x14] sm:$0xf0] }
  0xeb   : > { %1466 = vmatpush.bf16.msra.mxu0 %v2359_v24 }
  0xec   : > { %1562 = vmatpush.bf16.msra.mxu2 %v2411_v30  ;;  %1515 = vmatpush.bf16.msra.mxu1 %v2551_v10  ;;  %v2526_v30 = vld [vmem:[#allocation8 + $0x1b0] sm:$0xf] }
  0xed   : > { %v2527_v43 = vor.u32 %v2756_v36, %v2526_v30  ;;  %1614 = vmatpush.bf16.msra.mxu3 %v2531_v58  ;;  %v2750_v30 = vld [vmem:[#allocation8 + $0x194] sm:$0xf0]  ;;  %v2504_v58 = vld [vmem:[#allocation8 + $0x198] sm:$0xf0] }
  0xef   : > { %1467 = vmatpush.bf16.msra.mxu0 %v2335_v35  ;;  %v2312_v35 = vld [vmem:[#allocation8 + $0x18] sm:$0xf0] }
  0xf0   : > { %1563 = vmatpush.bf16.msra.mxu2 %v2387_v18  ;;  %1516 = vmatpush.bf16.msra.mxu1 %v2527_v43 }
  0xf4   : > { %1564 = vmatpush.bf16.msra.mxu2 %v2363_v13 }
  0xf8   : > { %1565 = vmatpush.bf16.msra.mxu2 %v2339_v46 }
 0x128   : > { %v509_v14 = vpop.xlane.xlu2 %508 }
 0x129   : > { %v555_v34 = vmul.f32 %v509_v14, %v3413_v33  ;;  %v2502_v14 = vld [vmem:[#allocation8 + $0x180] sm:$0xf] }
 0x12a   : > { %v2503_v46 = vor.u32 %v2750_v30, %v2502_v14 }
 0x12b   : > { %v3563_v55 = vadd.f32 1e-05, %v555_v34  ;;  %v2699_v34 = vld [vmem:[#allocation8 + $0x4] sm:$0xf] }
 0x12c   : > { %v2315_v49 = vor.u32 %v2699_v34, %v2312_v35  ;;  %1517 = vmatpush.bf16.msra.mxu1 %v2503_v46 }
 0x12d   : > { %2909 = vrsqrt.f32 %v3563_v55  ;;  %vm593_vm2 = vweird.f32 %v3563_v55 }
 0x12e   : > { %1566 = vmatpush.bf16.msra.mxu2 %v2315_v49  ;;  %v817_v49 = vld [vmem:[#allocation7] sm:$0x3] }
 0x12f   : > { %v518_v18 = vpop.xlane.xlu1 %517 }
 0x130   : > { %v558_v2 = vmul.f32 %v518_v18, %v3413_v33  ;;  %v401_v3 = vpop.xlane.xlu2 %400  ;;  %v512_v4 = vpop.xlane.xlu0 %511 }
 0x131   : > { %v436_v5 = vmul.f32 %v3413_v33, %v401_v3  ;;  %v556_v0 = vmul.f32 %v512_v4, %v3413_v33  ;;  %v2507_v3 = vor.u32 %v2747_v50, %v2504_v58 }
 0x132   : > { %v3569_v1 = vadd.f32 1e-05, %v558_v2 }
 0x133   : > { %v2910_v24 = vpop.eup %2909  ;;  %v3572_v6 = vsub.f32 %v3427_v47, %v436_v5  ;;  %v3575_v7 = vsub.f32 %v3430_v48, %v436_v5  ;;  %v3577_v25 = vadd.f32 1e-05, %v556_v0  ;;  %v2310_v47 = vld [vmem:[#allocation8] sm:$0xf]  ;;  %1615 = vmatpush.bf16.msra.mxu3 %v2507_v3 }
 0x134   : > { %v588_v10 = vmul.f32 %v2910_v24, %v3563_v55  ;;  %2911 = vrsqrt.f32 %v3569_v1  ;;  %v2311_v29 = vor.u32 %v2702_v22, %v2310_v47  ;;  %vm594_vm1 = vweird.f32 %v2910_v24 }
 0x135   : > { %2913 = vrsqrt.f32 %v3577_v25  ;;  %v493_v13 = vmul.f32 %v3572_v6, %v3572_v6  ;;  %v494_v16 = vmul.f32 %v3575_v7, %v3575_v7  ;;  %vm595_vm3 = vmor %vm593_vm2, %vm594_vm1  ;;  %vm603_vm5 = vweird.f32 %v3577_v25 }
 0x136   : > { %v589_v17 = vmul.f32 %v2910_v24, %v588_v10  ;;  %1468 = vmatpush.bf16.msra.mxu0 %v2311_v29  ;;  %vm623_vm6 = vweird.f32 %v3569_v1 }
 0x137   : > { %v521_v48 = vpop.xlane.xlu1 %520  ;;  %v534_v15 = vadd.f32 %v494_v16, %v493_v13 }
 0x138   : > { %v590_v36 = vmul.f32 0.5, %v589_v17  ;;  %v559_v20 = vmul.f32 %v521_v48, %v3413_v33  ;;  %v404_v21 = vpop.xlane.xlu2 %403  ;;  %v515_v43 = vpop.xlane.xlu0 %514 }
 0x139   : > { %v437_v18 = vmul.f32 %v3413_v33, %v404_v21  ;;  %v557_v2 = vmul.f32 %v515_v43, %v3413_v33  ;;  %535 = vadd.xlane.f32.xlu1 %v534_v15 }
 0x13a   : > { %v3589_v4 = vpop.eup %2911  ;;  %v591_v5 = vsub.f32 1.5, %v590_v36  ;;  %v3591_v0 = vadd.f32 1e-05, %v559_v20 }
 0x13b   : > { %v2914_v10 = vpop.eup %2913  ;;  %v618_v13 = vmul.f32 %v3589_v4, %v3569_v1  ;;  %v3596_v16 = vsub.f32 %v3472_v8, %v437_v18  ;;  %v3599_v17 = vsub.f32 %v3475_v9, %v437_v18  ;;  %v3604_v48 = vadd.f32 1e-05, %v557_v2  ;;  %v779_v9 = vld [vmem:[#allocation5] sm:$0x3] }
 0x13c   : > { %v592_v47 = vmul.f32 %v2910_v24, %v591_v5  ;;  %v598_v22 = vmul.f32 %v2914_v10, %v3577_v25  ;;  %2915 = vrsqrt.f32 %v3591_v0  ;;  %v3613_v46 = vperm.slane %v779_v9, 0 }
 0x13d   : > { %v619_v14 = vmul.f32 %v3589_v4, %v618_v13  ;;  %v495_v15 = vmul.f32 %v3596_v16, %v3596_v16  ;;  %v496_v8 = vmul.f32 %v3599_v17, %v3599_v17  ;;  %2917 = vrsqrt.f32 %v3604_v48 }
 0x13e   : > { %v599_v29 = vmul.f32 %v2914_v10, %v598_v22  ;;  %v596_v30 = vsel %vm595_vm3, %v2910_v24, %v592_v47  ;;  %vm604_vm4 = vweird.f32 %v2914_v10  ;;  %v3616_v18 = vperm.slane %v779_v9, 1 }
 0x13f   : > { %v537_v36 = vadd.f32 %v496_v8, %v495_v15  ;;  %v620_v20 = vmul.f32 0.5, %v619_v14  ;;  %v413_v21 = vpop.xlane.xlu1 %412  ;;  %v747_v50 = vmul.f32 %v596_v30, %v3416_v37  ;;  %v748_v24 = vmul.f32 %v596_v30, %v3418_v38  ;;  %vm605_vm7 = vmor %vm603_vm5, %vm604_vm4 }
 0x140   : > { %v600_v34 = vmul.f32 0.5, %v599_v29  ;;  %v524_v55 = vpop.xlane.xlu2 %523  ;;  %v407_v35 = vpop.xlane.xlu0 %406  ;;  %v3624_v47 = vperm.slane %v817_v49, 0  ;;  %v3626_v22 = vperm.slane %v817_v49, 1  ;;  %v440_v29 = vmul.f32 %v3413_v33, %v413_v21 }
 0x141   : > { %v560_v43 = vmul.f32 %v524_v55, %v3413_v33  ;;  %538 = vadd.xlane.f32.xlu2 %v537_v36  ;;  %v621_v37 = vsub.f32 1.5, %v620_v20  ;;  %v785_v14 = vmul.f32 %v3613_v46, %v747_v50  ;;  %v786_v25 = vmul.f32 %v3616_v18, %v748_v24 }
 0x142   : > { %v601_v58 = vsub.f32 1.5, %v600_v34  ;;  %v3619_v2 = vpop.eup %2915  ;;  %vm624_vm8 = vweird.f32 %v3589_v4  ;;  %v438_v49 = vmul.f32 %v3413_v33, %v407_v35  ;;  %vm613_vm10 = vweird.f32 %v3604_v48 }
 0x143   : > { %v3622_v5 = vadd.f32 1e-05, %v560_v43  ;;  %v2918_v13 = vpop.eup %2917  ;;  %v628_v30 = vmul.f32 %v3619_v2, %v3591_v0  ;;  %v622_v36 = vmul.f32 %v3589_v4, %v621_v37  ;;  %v823_v43 = vadd.f32 %v3624_v47, %v785_v14  ;;  %vm625_vm9 = vmor %vm623_vm6, %vm624_vm8 }
 0x144   : > { %v602_v3 = vmul.f32 %v2914_v10, %v601_v58  ;;  %v608_v38 = vmul.f32 %v2918_v13, %v3604_v48  ;;  %v824_v50 = vadd.f32 %v3626_v22, %v786_v25  ;;  %vm614_vm11 = vweird.f32 %v2918_v13 }
 0x145   : > { %2919 = vrsqrt.f32 %v3622_v5  ;;  %v629_v14 = vmul.f32 %v3619_v2, %v628_v30  ;;  %v3669_v30 = vsub.f32 %v3500_v28, %v438_v49  ;;  %vm615_vm12 = vmor %vm613_vm10, %vm614_vm11  ;;  %vm643_vm13 = vweird.f32 %v3622_v5 }
 0x146   : > { %v606_v15 = vsel %vm605_vm7, %v2914_v10, %v602_v3  ;;  %v609_v34 = vmul.f32 %v2918_v13, %v608_v38  ;;  %v3661_v38 = vsub.f32 %v3490_v26, %v440_v29  ;;  %vm633_vm15 = vweird.f32 %v3591_v0 }
 0x147   : > { %v749_v8 = vmul.f32 %v606_v15, %v3438_v53  ;;  %v750_v9 = vmul.f32 %v606_v15, %v3440_v54  ;;  %v3646_v54 = vsub.f32 %v3487_v23, %v440_v29  ;;  %v416_v3 = vpop.xlane.xlu1 %415  ;;  %v626_v23 = vsel %vm625_vm9, %v3589_v4, %v622_v36 }
 0x148   : > { %v527_v55 = vpop.xlane.xlu2 %526  ;;  %v410_v10 = vpop.xlane.xlu0 %409  ;;  %v610_v53 = vmul.f32 0.5, %v609_v34  ;;  %v441_v48 = vmul.f32 %v3413_v33, %v416_v3  ;;  %v754_v28 = vmul.f32 %v626_v23, %v3436_v52  ;;  %vm634_vm0 = vweird.f32 %v3619_v2 }
 0x149   : > { %v787_v20 = vmul.f32 %v3613_v46, %v749_v8  ;;  %v788_v21 = vmul.f32 %v3616_v18, %v750_v9  ;;  %v561_v37 = vmul.f32 %v527_v55, %v3413_v33  ;;  %v3666_v9 = vsub.f32 %v3497_v27, %v438_v49  ;;  %vm635_vm2 = vmor %vm633_vm15, %vm634_vm0 }
 0x14a   : > { %v611_v15 = vsub.f32 1.5, %v610_v53  ;;  %v439_v26 = vmul.f32 %v3413_v33, %v410_v10  ;;  %v501_v29 = vmul.f32 %v3646_v54, %v3646_v54  ;;  %v753_v27 = vmul.f32 %v626_v23, %v3434_v51 }
 0x14b   : > { %v825_v58 = vadd.f32 %v3624_v47, %v787_v20  ;;  %v826_v24 = vadd.f32 %v3626_v22, %v788_v21  ;;  %v3663_v25 = vpop.eup %2919  ;;  %v3674_v34 = vadd.f32 1e-05, %v561_v37  ;;  %v630_v55 = vmul.f32 0.5, %v629_v14 }
 0x14c   : > { %v612_v8 = vmul.f32 %v2918_v13, %v611_v15  ;;  %v638_v4 = vmul.f32 %v3663_v25, %v3622_v5  ;;  %v3691_v51 = vsub.f32 %v3514_v39, %v441_v48  ;;  %v3694_v52 = vsub.f32 %v3517_v40, %v441_v48 }
 0x14d   : > { %v3656_v1 = vpack.c.bf16 %v825_v58, %v823_v43  ;;  %v3658_v35 = vpack.c.bf16 %v826_v24, %v824_v50  ;;  %v502_v43 = vmul.f32 %v3661_v38, %v3661_v38  ;;  %2921 = vrsqrt.f32 %v3674_v34 }
 0x14e   : > { %v616_v36 = vsel %vm615_vm12, %v2918_v13, %v612_v8  ;;  %v639_v10 = vmul.f32 %v3663_v25, %v638_v4  ;;  %v3702_v50 = vsub.f32 %v3524_v41, %v439_v26  ;;  %v3705_v24 = vsub.f32 %v3527_v42, %v439_v26 }
 0x14f   : > { %1469 = vmatmul.bf16.vlgmr.msra.gmra.mxu0 %v3656_v1  ;;  %1518 = vmatmul.bf16.vlgmr.msra.gmra.mxu1 %v3658_v35  ;;  %v751_v20 = vmul.f32 %v616_v36, %v3453_v60  ;;  %v752_v21 = vmul.f32 %v616_v36, %v3456_v61  ;;  %v497_v60 = vmul.f32 %v3666_v9, %v3666_v9  ;;  %v631_v48 = vsub.f32 1.5, %v630_v55 }
 0x150   : > { %1567 = vmatmul.bf16.vlgmr.msra.gmra.mxu2 %v3656_v1  ;;  %1616 = vmatmul.bf16.vlgmr.msra.gmra.mxu3 %v3658_v35  ;;  %v419_v53 = vpop.xlane.xlu2 %418  ;;  %v530_v49 = vpop.xlane.xlu0 %529  ;;  %v498_v61 = vmul.f32 %v3669_v30, %v3669_v30  ;;  %v640_v13 = vmul.f32 0.5, %v639_v10  ;;  %v546_v58 = vadd.f32 %v502_v43, %v501_v29  ;;  %v791_v37 = vmul.f32 %v3613_v46, %v753_v27 }
 0x151   : > { %v442_v40 = vmul.f32 %v3413_v33, %v419_v53  ;;  %v562_v3 = vmul.f32 %v530_v49, %v3413_v33  ;;  %v789_v14 = vmul.f32 %v3613_v46, %v751_v20  ;;  %v790_v15 = vmul.f32 %v3616_v18, %v752_v21 }
 0x152   : > { %v540_v39 = vadd.f32 %v498_v61, %v497_v60  ;;  %547 = vadd.xlane.f32.xlu2 %v546_v58  ;;  %v792_v23 = vmul.f32 %v3616_v18, %v754_v28  ;;  %v641_v41 = vsub.f32 1.5, %v640_v13  ;;  %v503_v42 = vmul.f32 %v3691_v51, %v3691_v51 }
 0x153   : > { %v504_v8 = vmul.f32 %v3694_v52, %v3694_v52  ;;  %vm644_vm14 = vweird.f32 %v3663_v25  ;;  %v3719_v4 = vadd.f32 1e-05, %v562_v3  ;;  %v3722_v26 = vsub.f32 %v3545_v59, %v442_v40  ;;  %v3731_v36 = vpop.eup %2921 }
 0x154   : > { %541 = vadd.xlane.f32.xlu0 %v540_v39  ;;  %v3725_v29 = vsub.f32 %v3548_v19, %v442_v40  ;;  %v499_v27 = vmul.f32 %v3702_v50, %v3702_v50  ;;  %v500_v28 = vmul.f32 %v3705_v24, %v3705_v24  ;;  %v827_v55 = vadd.f32 %v3624_v47, %v789_v14  ;;  %vm645_vm1 = vmor %vm643_vm13, %vm644_vm14 }
 0x155   : > { %v828_v20 = vadd.f32 %v3626_v22, %v790_v15  ;;  %2923 = vrsqrt.f32 %v3719_v4  ;;  %v642_v59 = vmul.f32 %v3663_v25, %v641_v41  ;;  %v549_v19 = vadd.f32 %v504_v8, %v503_v42  ;;  %v2488_v15 = vld [vmem:[#allocation8 + $0x170] sm:$0xf0] }
 0x156   : > { %v543_v21 = vadd.f32 %v500_v28, %v499_v27  ;;  %v829_v10 = vadd.f32 %v3624_v47, %v791_v37  ;;  %v830_v43 = vadd.f32 %v3626_v22, %v792_v23  ;;  %v632_v53 = vmul.f32 %v3619_v2, %v631_v48  ;;  %v2790_v23 = vld [vmem:[#allocation8 + $0x2dc] sm:$0xf]  ;;  %v2680_v8 = vld [vmem:[#allocation8 + $0x2f0] sm:$0xf0]  ;;  %v2486_v48 = vld [vmem:[#allocation8 + $0x158] sm:$0xf] }
 0x157   : > { %v648_v49 = vmul.f32 %v3731_v36, %v3674_v34  ;;  %v505_v60 = vmul.f32 %v3722_v26, %v3722_v26  ;;  %v506_v61 = vmul.f32 %v3725_v29, %v3725_v29  ;;  %v646_v5 = vsel %vm645_vm1, %v3663_v25, %v642_v59  ;;  %v2742_v25 = vld [vmem:[#allocation8 + $0x15c] sm:$0xf]  ;;  %v2678_v59 = vld [vmem:[#allocation8 + $0x2d8] sm:$0xf] }
 0x158   : > { %544 = vadd.xlane.f32.xlu1 %v543_v21  ;;  %v3754_v13 = vpack.c.bf16 %v829_v10, %v827_v55  ;;  %v3756_v58 = vpack.c.bf16 %v830_v43, %v828_v20  ;;  %v636_v40 = vsel %vm635_vm2, %v3619_v2, %v632_v53  ;;  %v757_v14 = vmul.f32 %v646_v5, %v3478_v11  ;;  %v2745_v20 = vld [vmem:[#allocation8 + $0x16c] sm:$0xf0]  ;;  %v2736_v43 = vld [vmem:[#allocation8 + $0x12c] sm:$0xf] }
 0x159   : > { %v649_v3 = vmul.f32 %v3731_v36, %v648_v49  ;;  %v552_v37 = vadd.f32 %v506_v61, %v505_v60  ;;  %v758_v41 = vmul.f32 %v646_v5, %v3481_v12  ;;  %v2491_v2 = vor.u32 %v2742_v25, %v2488_v15  ;;  %v2793_v11 = vld [vmem:[#allocation8 + $0x2ec] sm:$0xf0]  ;;  %v2464_v12 = vld [vmem:[#allocation8 + $0x140] sm:$0xf0]  ;;  %v2784_v61 = vld [vmem:[#allocation8 + $0x2ac] sm:$0xf] }
 0x15a   : > { %v755_v27 = vmul.f32 %v636_v40, %v3444_v56  ;;  %v756_v28 = vmul.f32 %v636_v40, %v3446_v57  ;;  %v2683_v55 = vor.u32 %v2790_v23, %v2680_v8  ;;  %v2487_v10 = vor.u32 %v2745_v20, %v2486_v48  ;;  %v2656_v56 = vld [vmem:[#allocation8 + $0x2c0] sm:$0xf0]  ;;  %v2654_v23 = vld [vmem:[#allocation8 + $0x2a8] sm:$0xf]  ;;  %v2440_v8 = vld [vmem:[#allocation8 + $0x110] sm:$0xf0] }
 0x15b   : > { %v3759_v39 = vpop.eup %2923  ;;  %1755 = vmatpush.bf16.msrb.mxu2 %v2491_v2  ;;  %v795_v53 = vmul.f32 %v3613_v46, %v757_v14  ;;  %v2679_v49 = vor.u32 %v2793_v11, %v2678_v59  ;;  %v2467_v60 = vor.u32 %v2736_v43, %v2464_v12  ;;  %v796_v57 = vmul.f32 %v3616_v18, %v758_v41  ;;  %v2787_v14 = vld [vmem:[#allocation8 + $0x2bc] sm:$0xf0] }
 0x15c   : > { %550 = vadd.xlane.f32.xlu0 %v549_v19  ;;  %v658_v0 = vmul.f32 %v3759_v39, %v3719_v4  ;;  %v650_v19 = vmul.f32 0.5, %v649_v3  ;;  %1804 = vmatpush.bf16.msrb.mxu3 %v2683_v55  ;;  %v2659_v40 = vor.u32 %v2784_v61, %v2656_v56  ;;  %v2739_v3 = vld [vmem:[#allocation8 + $0x13c] sm:$0xf0]  ;;  %v794_v25 = vmul.f32 %v3616_v18, %v756_v28 }
 0x15d   : > { %1657 = vmatpush.bf16.msrb.mxu0 %v2487_v10  ;;  %1706 = vmatpush.bf16.msrb.mxu1 %v2679_v49  ;;  %vm663_vm3 = vweird.f32 %v3719_v4  ;;  %vm664_vm4 = vweird.f32 %v3759_v39  ;;  %v2655_v41 = vor.u32 %v2787_v14, %v2654_v23  ;;  %v833_v48 = vadd.f32 %v3624_v47, %v795_v53  ;;  %v2733_v14 = vld [vmem:[#allocation8 + $0x10c] sm:$0xf0] }
 0x15e   : > { %v659_v42 = vmul.f32 %v3759_v39, %v658_v0  ;;  %v2462_v0 = vld [vmem:[#allocation8 + $0x128] sm:$0xf]  ;;  %v651_v2 = vsub.f32 1.5, %v650_v19  ;;  %vm653_vm5 = vweird.f32 %v3674_v34  ;;  %vm654_vm6 = vweird.f32 %v3731_v36  ;;  %vm665_vm7 = vmor %vm663_vm3, %vm664_vm4 }
 0x15f   : > { %1474 = vmatmul.bf16.gmra.mxu0 %v3754_v13  ;;  %1523 = vmatmul.bf16.gmra.mxu1 %v3756_v58  ;;  %v2463_v15 = vor.u32 %v2739_v3, %v2462_v0  ;;  %v832_v20 = vadd.f32 %v3626_v22, %v794_v25  ;;  %vm655_vm8 = vmor %vm653_vm5, %vm654_vm6  ;;  %v2632_v25 = vld [vmem:[#allocation8 + $0x290] sm:$0xf0] }
 0x160   : > { %1572 = vmatmul.bf16.gmra.mxu2 %v3754_v13  ;;  %1621 = vmatmul.bf16.gmra.mxu3 %v3756_v58  ;;  %v660_v21 = vmul.f32 0.5, %v659_v42  ;;  %v2730_v42 = vld [vmem:[#allocation8 + $0xfc] sm:$0xf]  ;;  %v652_v59 = vmul.f32 %v3731_v36, %v651_v2  ;;  %v2781_v2 = vld [vmem:[#allocation8 + $0x28c] sm:$0xf0] }
 0x161   : > { %553 = vadd.xlane.f32.xlu1 %v552_v37  ;;  %v793_v37 = vmul.f32 %v3613_v46, %v755_v27  ;;  %1756 = vmatpush.bf16.msrb.mxu2 %v2467_v60  ;;  %v2443_v55 = vor.u32 %v2730_v42, %v2440_v8  ;;  %v834_v27 = vadd.f32 %v3626_v22, %v796_v57  ;;  %v2630_v42 = vld [vmem:[#allocation8 + $0x278] sm:$0xf] }
 0x162   : > { %v661_v5 = vsub.f32 1.5, %v660_v21  ;;  %1805 = vmatpush.bf16.msrb.mxu3 %v2659_v40  ;;  %1658 = vmatpush.bf16.msrb.mxu0 %v2463_v15  ;;  %v656_v21 = vsel %vm655_vm8, %v3731_v36, %v652_v59  ;;  %v2438_v15 = vld [vmem:[#allocation8 + $0xf8] sm:$0xf]  ;;  %v2416_v59 = vld [vmem:[#allocation8 + $0xe0] sm:$0xf0] }
 0x163   : > { %v831_v4 = vadd.f32 %v3624_v47, %v793_v37  ;;  %1707 = vmatpush.bf16.msrb.mxu1 %v2655_v41  ;;  %v3790_v19 = vpack.c.bf16 %v834_v27, %v832_v20  ;;  %v759_v12 = vmul.f32 %v656_v21, %v3505_v31  ;;  %v760_v53 = vmul.f32 %v656_v21, %v3508_v32  ;;  %v533_v32 = vpop.xlane.xlu0 %532  ;;  %v2778_v37 = vld [vmem:[#allocation8 + $0x27c] sm:$0xf]  ;;  %v2724_v20 = vld [vmem:[#allocation8 + $0xcc] sm:$0xf] }
 0x164   : > { %v662_v28 = vmul.f32 %v3759_v39, %v661_v5  ;;  %v563_v5 = vmul.f32 %v533_v32, %v3413_v33  ;;  %v2635_v23 = vor.u32 %v2778_v37, %v2632_v25  ;;  %v2439_v8 = vor.u32 %v2733_v14, %v2438_v15 }
 0x165   : > { %1757 = vmatpush.bf16.msrb.mxu2 %v2443_v55  ;;  %v3788_v11 = vpack.c.bf16 %v833_v48, %v831_v4  ;;  %v797_v36 = vmul.f32 %v3613_v46, %v759_v12  ;;  %v798_v60 = vmul.f32 %v3616_v18, %v760_v53  ;;  %v2631_v48 = vor.u32 %v2781_v2, %v2630_v42  ;;  %v2772_v42 = vld [vmem:[#allocation8 + $0x24c] sm:$0xf]  ;;  %v2608_v2 = vld [vmem:[#allocation8 + $0x260] sm:$0xf0] }
 0x166   : > { %v666_v34 = vsel %vm665_vm7, %v3759_v39, %v662_v28  ;;  %v579_v40 = vadd.f32 1e-05, %v563_v5  ;;  %1806 = vmatpush.bf16.msrb.mxu3 %v2635_v23  ;;  %1659 = vmatpush.bf16.msrb.mxu0 %v2439_v8 }
 0x167   : > { %v761_v10 = vmul.f32 %v666_v34, %v3532_v44  ;;  %v762_v43 = vmul.f32 %v666_v34, %v3535_v45  ;;  %v835_v56 = vadd.f32 %v3624_v47, %v797_v36  ;;  %v836_v45 = vadd.f32 %v3626_v22, %v798_v60  ;;  %1708 = vmatpush.bf16.msrb.mxu1 %v2631_v48 }
 0x168   : > { %2925 = vrsqrt.f32 %v579_v40  ;;  %v2419_v34 = vor.u32 %v2724_v20, %v2416_v59  ;;  %vm673_vm9 = vweird.f32 %v579_v40  ;;  %v2611_v48 = vor.u32 %v2772_v42, %v2608_v2  ;;  %v2775_v20 = vld [vmem:[#allocation8 + $0x25c] sm:$0xf0] }
 0x169   : > { %v799_v39 = vmul.f32 %v3613_v46, %v761_v10  ;;  %v800_v49 = vmul.f32 %v3616_v18, %v762_v43 }
 0x16a   : > { %1758 = vmatpush.bf16.msrb.mxu2 %v2419_v34  ;;  %1807 = vmatpush.bf16.msrb.mxu3 %v2611_v48  ;;  %v2390_v48 = vld [vmem:[#allocation8 + $0x98] sm:$0xf] }
 0x16b   : > { %v837_v61 = vadd.f32 %v3624_v47, %v799_v39  ;;  %v838_v44 = vadd.f32 %v3626_v22, %v800_v49 }
 0x16d   : > { %v3810_v57 = vpack.c.bf16 %v837_v61, %v835_v56  ;;  %v3812_v31 = vpack.c.bf16 %v838_v44, %v836_v45 }
 0x16e   : > { %v2926_v0 = vpop.eup %2925 }
 0x16f   : > { %1479 = vmatmul.bf16.gmra.mxu0 %v3788_v11  ;;  %1528 = vmatmul.bf16.gmra.mxu1 %v3790_v19  ;;  %v668_v3 = vmul.f32 %v2926_v0, %v579_v40  ;;  %vm674_vm10 = vweird.f32 %v2926_v0 }
 0x170   : > { %1577 = vmatmul.bf16.gmra.mxu2 %v3788_v11  ;;  %1626 = vmatmul.bf16.gmra.mxu3 %v3790_v19  ;;  %vm675_vm11 = vmor %vm673_vm9, %vm674_vm10 }
 0x171   : > { %v669_v41 = vmul.f32 %v2926_v0, %v668_v3 }
 0x173   : > { %v670_v28 = vmul.f32 0.5, %v669_v41  ;;  %v2414_v41 = vld [vmem:[#allocation8 + $0xc8] sm:$0xf] }
 0x175   : > { %v671_v21 = vsub.f32 1.5, %v670_v28 }
 0x177   : > { %v672_v53 = vmul.f32 %v2926_v0, %v671_v21 }
 0x179   : > { %v676_v60 = vsel %vm675_vm11, %v2926_v0, %v672_v53 }
 0x17a   : > { %v763_v44 = vmul.f32 %v676_v60, %v3551_v62  ;;  %v764_v56 = vmul.f32 %v676_v60, %v3554_v63  ;;  %v967_v60 = vld [vmem:[#allocation10] sm:$0x3f] }
 0x17c   : > { %v801_v40 = vmul.f32 %v3613_v46, %v763_v44  ;;  %v802_v3 = vmul.f32 %v3616_v18, %v764_v56  ;;  %v2718_v56 = vld [vmem:[#allocation8 + $0x9c] sm:$0xf] }
 0x17e   : > { %v839_v23 = vadd.f32 %v3624_v47, %v801_v40  ;;  %v840_v14 = vadd.f32 %v3626_v22, %v802_v3 }
 0x17f   : > { %1484 = vmatmul.bf16.gmra.mxu0 %v3810_v57  ;;  %1533 = vmatmul.bf16.gmra.mxu1 %v3812_v31 }
 0x180   : > { %1582 = vmatmul.bf16.gmra.mxu2 %v3810_v57  ;;  %1631 = vmatmul.bf16.gmra.mxu3 %v3812_v31 }
 0x1ac   : > { %v536_v55 = vpop.xlane.xlu1 %535 }
 0x1ad   : > { %v564_v27 = vmul.f32 %v536_v55, %v3413_v33  ;;  %v2727_v55 = vld [vmem:[#allocation8 + $0xdc] sm:$0xf0] }
 0x1af   : > { %v580_v4 = vadd.f32 1e-05, %v564_v27  ;;  %v2606_v27 = vld [vmem:[#allocation8 + $0x248] sm:$0xf] }
 0x1b1   : > { %2927 = vrsqrt.f32 %v580_v4  ;;  %vm683_vm13 = vweird.f32 %v580_v4 }
 0x1b4   : > { %v539_v10 = vpop.xlane.xlu2 %538 }
 0x1b5   : > { %v565_v43 = vmul.f32 %v539_v10, %v3413_v33 }
 0x1b7   : > { %v2928_v12 = vpop.eup %2927  ;;  %v3821_v49 = vadd.f32 1e-05, %v565_v43 }
 0x1b8   : > { %v678_v39 = vmul.f32 %v2928_v12, %v580_v4  ;;  %vm684_vm12 = vweird.f32 %v2928_v12  ;;  %v2415_v4 = vor.u32 %v2727_v55, %v2414_v41 }
 0x1b9   : > { %2929 = vrsqrt.f32 %v3821_v49  ;;  %vm685_vm14 = vmor %vm683_vm13, %vm684_vm12  ;;  %vm693_vm15 = vweird.f32 %v3821_v49 }
 0x1ba   : > { %v679_v36 = vmul.f32 %v2928_v12, %v678_v39  ;;  %1660 = vmatpush.bf16.msrb.mxu0 %v2415_v4 }
 0x1bc   : > { %v680_v61 = vmul.f32 0.5, %v679_v36 }
 0x1be   : > { %v681_v45 = vsub.f32 1.5, %v680_v61 }
 0x1bf   : > { %v3826_v32 = vpop.eup %2929 }
 0x1c0   : > { %v682_v5 = vmul.f32 %v2928_v12, %v681_v45  ;;  %v688_v62 = vmul.f32 %v3826_v32, %v3821_v49  ;;  %v2392_v45 = vld [vmem:[#allocation8 + $0xb0] sm:$0xf0]  ;;  %vm694_vm0 = vweird.f32 %v3826_v32 }
 0x1c1   : > { %v2395_v3 = vor.u32 %v2718_v56, %v2392_v45  ;;  %vm695_vm1 = vmor %vm693_vm15, %vm694_vm0  ;;  %v2712_v56 = vld [vmem:[#allocation8 + $0x6c] sm:$0xf] }
 0x1c2   : > { %v686_v37 = vsel %vm685_vm14, %v2928_v12, %v682_v5  ;;  %v2607_v12 = vor.u32 %v2775_v20, %v2606_v27 }
 0x1c3   : > { %v765_v25 = vmul.f32 %v686_v37, %v3572_v6  ;;  %v766_v0 = vmul.f32 %v686_v37, %v3575_v7  ;;  %v689_v7 = vmul.f32 %v3826_v32, %v688_v62  ;;  %v3857_v37 = vperm.slane %v967_v60, 0  ;;  %1759 = vmatpush.bf16.msrb.mxu2 %v2395_v3 }
 0x1c4   : > { %1709 = vmatpush.bf16.msrb.mxu1 %v2607_v12 }
 0x1c5   : > { %v803_v63 = vmul.f32 %v3613_v46, %v765_v25  ;;  %v804_v15 = vmul.f32 %v3616_v18, %v766_v0  ;;  %v548_v28 = vpop.xlane.xlu2 %547  ;;  %v690_v53 = vmul.f32 0.5, %v689_v7  ;;  %v2584_v7 = vld [vmem:[#allocation8 + $0x230] sm:$0xf0] }
 0x1c6   : > { %v568_v21 = vmul.f32 %v548_v28, %v3413_v33 }
 0x1c7   : > { %v841_v8 = vadd.f32 %v3624_v47, %v803_v63  ;;  %v842_v6 = vadd.f32 %v3626_v22, %v804_v15  ;;  %v542_v10 = vpop.xlane.xlu0 %541  ;;  %v691_v5 = vsub.f32 1.5, %v690_v53  ;;  %v3863_v15 = vperm.slane %v967_v60, 1 }
 0x1c8   : > { %v566_v43 = vmul.f32 %v542_v10, %v3413_v33  ;;  %v3847_v39 = vadd.f32 1e-05, %v568_v21  ;;  %v2721_v21 = vld [vmem:[#allocation8 + $0xac] sm:$0xf0]  ;;  %v2582_v10 = vld [vmem:[#allocation8 + $0x218] sm:$0xf] }
 0x1c9   : > { %v3841_v59 = vpack.c.bf16 %v841_v8, %v839_v23  ;;  %v3843_v34 = vpack.c.bf16 %v842_v6, %v840_v14  ;;  %v692_v14 = vmul.f32 %v3826_v32, %v691_v5  ;;  %v2766_v6 = vld [vmem:[#allocation8 + $0x21c] sm:$0xf]  ;;  %v2391_v53 = vor.u32 %v2721_v21, %v2390_v48  ;;  %v2715_v48 = vld [vmem:[#allocation8 + $0x7c] sm:$0xf0] }
 0x1ca   : > { %v3851_v36 = vadd.f32 1e-05, %v566_v43  ;;  %2931 = vrsqrt.f32 %v3847_v39  ;;  %v2587_v20 = vor.u32 %v2766_v6, %v2584_v7  ;;  %v2560_v6 = vld [vmem:[#allocation8 + $0x200] sm:$0xf0]  ;;  %v2366_v7 = vld [vmem:[#allocation8 + $0x68] sm:$0xf]  ;;  %vm723_vm5 = vweird.f32 %v3847_v39 }
 0x1cb   : > { %1489 = vmatmul.bf16.gmra.mxu0 %v3841_v59  ;;  %1538 = vmatmul.bf16.gmra.mxu1 %v3843_v34  ;;  %v545_v40 = vpop.xlane.xlu1 %544  ;;  %v696_v45 = vsel %vm695_vm1, %v3826_v32, %v692_v14 }
 0x1cc   : > { %1587 = vmatmul.bf16.gmra.mxu2 %v3841_v59  ;;  %v1470_v61 = vpop.f32.mrf.mxu0  ;;  %v1519_v44 = vpop.f32.mrf.mxu1  ;;  %1636 = vmatmul.bf16.gmra.mxu3 %v3843_v34  ;;  %2933 = vrsqrt.f32 %v3851_v36  ;;  %v567_v25 = vmul.f32 %v545_v40, %v3413_v33  ;;  %vm703_vm3 = vweird.f32 %v3851_v36 }
 0x1cd   : > { %v1471_v42 = vadd.f32 %v1470_v61, %v3857_v37  ;;  %v2769_v61 = vld [vmem:[#allocation8 + $0x22c] sm:$0xf0]  ;;  %1808 = vmatpush.bf16.msrb.mxu3 %v2587_v20  ;;  %1661 = vmatpush.bf16.msrb.mxu0 %v2391_v53  ;;  %v2763_v20 = vld [vmem:[#allocation8 + $0x1fc] sm:$0xf0] }
 0x1ce   : > { %v3860_v62 = vadd.f32 1e-05, %v567_v25  ;;  %v2583_v25 = vor.u32 %v2769_v61, %v2582_v10 }
 0x1cf   : > { %v551_v0 = vpop.xlane.xlu0 %550  ;;  %v1520_v40 = vadd.f32 %v1519_v44, %v1471_v42  ;;  %v2367_v42 = vor.u32 %v2715_v48, %v2366_v7 }
 0x1d0   : > { %v569_v63 = vmul.f32 %v551_v0, %v3413_v33  ;;  %v3865_v23 = vpop.eup %2931  ;;  %2935 = vrsqrt.f32 %v3860_v62  ;;  %v2368_v0 = vld [vmem:[#allocation8 + $0x80] sm:$0xf0]  ;;  %1710 = vmatpush.bf16.msrb.mxu1 %v2583_v25  ;;  %v768_v25 = vmul.f32 %v696_v45, %v3599_v17  ;;  %vm713_vm7 = vweird.f32 %v3860_v62 }
 0x1d1   : > { %v718_v8 = vmul.f32 %v3865_v23, %v3847_v39  ;;  %v2371_v14 = vor.u32 %v2712_v56, %v2368_v0  ;;  %1662 = vmatpush.bf16.msrb.mxu0 %v2367_v42  ;;  %vm724_vm6 = vweird.f32 %v3865_v23  ;;  %v2342_v39 = vld [vmem:[#allocation8 + $0x38] sm:$0xf] }
 0x1d2   : > { %v3872_v41 = vpop.eup %2933  ;;  %v3879_v4 = vadd.f32 1e-05, %v569_v63  ;;  %v2760_v63 = vld [vmem:[#allocation8 + $0x1ec] sm:$0xf]  ;;  %v806_v42 = vmul.f32 %v3616_v18, %v768_v25  ;;  %vm3942_vm9 = vmor %vm723_vm5, %vm724_vm6 }
 0x1d3   : > { %v1568_v2 = vpop.f32.mrf.mxu2  ;;  %v1617_v55 = vpop.f32.mrf.mxu3  ;;  %v698_v28 = vmul.f32 %v3872_v41, %v3851_v36  ;;  %v719_v12 = vmul.f32 %v3865_v23, %v718_v8  ;;  %v2563_v44 = vor.u32 %v2760_v63, %v2560_v6  ;;  %vm704_vm2 = vweird.f32 %v3872_v41  ;;  %1760 = vmatpush.bf16.msrb.mxu2 %v2371_v14  ;;  %v2754_v14 = vld [vmem:[#allocation8 + $0x1bc] sm:$0xf] }
 0x1d4   : > { %v1472_v27 = vpop.f32.mrf.mxu0  ;;  %v1521_v43 = vpop.f32.mrf.mxu1  ;;  %v1569_v60 = vadd.f32 %v1568_v2, %v3863_v15  ;;  %2937 = vrsqrt.f32 %v3879_v4  ;;  %vm705_vm4 = vmor %vm703_vm3, %vm704_vm2  ;;  %vm733_vm13 = vweird.f32 %v3879_v4 }
 0x1d5   : > { %v699_v5 = vmul.f32 %v3872_v41, %v698_v28  ;;  %v554_v3 = vpop.xlane.xlu1 %553  ;;  %v1473_v2 = vadd.f32 %v1472_v27, %v3857_v37  ;;  %v2558_v28 = vld [vmem:[#allocation8 + $0x1e8] sm:$0xf]  ;;  %v720_v10 = vmul.f32 0.5, %v719_v12  ;;  %v767_v27 = vmul.f32 %v696_v45, %v3596_v16  ;;  %1809 = vmatpush.bf16.msrb.mxu3 %v2563_v44  ;;  %v2536_v44 = vld [vmem:[#allocation8 + $0x1d0] sm:$0xf0] }
 0x1d6   : > { %v570_v49 = vmul.f32 %v554_v3, %v3413_v33  ;;  %v1618_v8 = vadd.f32 %v1617_v55, %v1569_v60  ;;  %v3892_v21 = vpop.eup %2935  ;;  %v2559_v53 = vor.u32 %v2763_v20, %v2558_v28  ;;  %v2706_v55 = vld [vmem:[#allocation8 + $0x3c] sm:$0xf]  ;;  %v2344_v3 = vld [vmem:[#allocation8 + $0x50] sm:$0xf0] }
 0x1d7   : > { %v700_v32 = vmul.f32 0.5, %v699_v5  ;;  %v708_v56 = vmul.f32 %v3892_v21, %v3860_v62  ;;  %v2347_v17 = vor.u32 %v2706_v55, %v2344_v3  ;;  %v805_v48 = vmul.f32 %v3613_v46, %v767_v27 }
 0x1d8   : > { %v3894_v61 = vadd.f32 1e-05, %v570_v49  ;;  %v2049_v33 = vpack.c.bf16 %v1618_v8, %v1520_v40  ;;  %1711 = vmatpush.bf16.msrb.mxu1 %v2559_v53  ;;  %v721_v49 = vsub.f32 1.5, %v720_v10  ;;  %v1522_v8 = vadd.f32 %v1521_v43, %v1473_v2 }
 0x1d9   : > { %v701_v60 = vsub.f32 1.5, %v700_v32  ;;  %v709_v63 = vmul.f32 %v3892_v21, %v708_v56  ;;  %1761 = vmatpush.bf16.msrb.mxu2 %v2347_v17  ;;  %vm714_vm8 = vweird.f32 %v3892_v21  ;;  %v844_v3 = vadd.f32 %v3626_v22, %v806_v42 }
 0x1da   : > { %2939 = vrsqrt.f32 %v3894_v61  ;;  %2097 = vst [vmem:[%s3904_s2] sm:$0xff] %v2049_v33  ;;  %v3911_v45 = vpop.eup %2937  ;;  %v722_v2 = vmul.f32 %v3865_v23, %v721_v49  ;;  %vm715_vm10 = vmor %vm713_vm7, %vm714_vm8  ;;  %v2709_v49 = vld [vmem:[#allocation8 + $0x4c] sm:$0xf0]  ;;  %vm743_vm11 = vweird.f32 %v3894_v61 }
 0x1db   : > { %v1570_v5 = vpop.f32.mrf.mxu2  ;;  %v1619_v12 = vpop.f32.mrf.mxu3  ;;  %v702_v0 = vmul.f32 %v3872_v41, %v701_v60  ;;  %v710_v36 = vmul.f32 0.5, %v709_v63  ;;  %v728_v55 = vmul.f32 %v3911_v45, %v3879_v4  ;;  %vm734_vm14 = vweird.f32 %v3911_v45 }
 0x1dc   : > { %v1571_v16 = vadd.f32 %v1570_v5, %v3863_v15  ;;  %v1475_v40 = vpop.f32.mrf.mxu0  ;;  %v1524_v6 = vpop.f32.mrf.mxu1  ;;  %v843_v5 = vadd.f32 %v3624_v47, %v805_v48  ;;  %v726_v62 = vsel %vm3942_vm9, %v3865_v23, %v722_v2  ;;  %v2320_v23 = vld [vmem:[#allocation8 + $0x20] sm:$0xf0]  ;;  %vm735_vm0 = vmor %vm733_vm13, %vm734_vm14 }
 0x1dd   : > { %v706_v32 = vsel %vm705_vm4, %v3872_v41, %v702_v0  ;;  %v711_v43 = vsub.f32 1.5, %v710_v36  ;;  %v1476_v60 = vadd.f32 %v1475_v40, %v3857_v37  ;;  %v2534_v36 = vld [vmem:[#allocation8 + $0x1b8] sm:$0xf]  ;;  %v773_v2 = vmul.f32 %v726_v62, %v3646_v54  ;;  %v2703_v54 = vld [vmem:[#allocation8 + $0x1c] sm:$0xf0] }
 0x1de   : > { %v1620_v7 = vadd.f32 %v1619_v12, %v1571_v16  ;;  %v769_v28 = vmul.f32 %v706_v32, %v3666_v9  ;;  %v770_v20 = vmul.f32 %v706_v32, %v3669_v30  ;;  %v2539_v9 = vor.u32 %v2754_v14, %v2536_v44  ;;  %v2757_v14 = vld [vmem:[#allocation8 + $0x1cc] sm:$0xf0] }
 0x1df   : > { %v712_v30 = vmul.f32 %v3892_v21, %v711_v43  ;;  %v729_v44 = vmul.f32 %v3911_v45, %v728_v55  ;;  %v1525_v42 = vadd.f32 %v1524_v6, %v1476_v60  ;;  %v2535_v43 = vor.u32 %v2757_v14, %v2534_v36 }
 0x1e0   : > { %v2052_v10 = vpack.c.bf16 %v1620_v7, %v1522_v8  ;;  %v3924_v41 = vpop.eup %2939  ;;  %v807_v33 = vmul.f32 %v3613_v46, %v769_v28  ;;  %v808_v53 = vmul.f32 %v3616_v18, %v770_v20  ;;  %1810 = vmatpush.bf16.msrb.mxu3 %v2539_v9  ;;  %v2343_v20 = vor.u32 %v2709_v49, %v2342_v39  ;;  %v2748_v9 = vld [vmem:[#allocation8 + $0x18c] sm:$0xf] }
 0x1e1   : > { %v738_v27 = vmul.f32 %v3924_v41, %v3894_v61  ;;  %v716_v48 = vsel %vm715_vm10, %v3892_v21, %v712_v30  ;;  %v2512_v30 = vld [vmem:[#allocation8 + $0x1a0] sm:$0xf0]  ;;  %v730_v55 = vmul.f32 0.5, %v729_v44  ;;  %1712 = vmatpush.bf16.msrb.mxu1 %v2535_v43  ;;  %vm744_vm12 = vweird.f32 %v3924_v41 }
 0x1e2   : > { %2100 = vst [vmem:[%s3904_s2 + $0x18] sm:$0xff] %v2052_v10  ;;  %v845_v16 = vadd.f32 %v3624_v47, %v807_v33  ;;  %v846_v12 = vadd.f32 %v3626_v22, %v808_v53  ;;  %v771_v21 = vmul.f32 %v716_v48, %v3702_v50  ;;  %v2700_v33 = vld [vmem:[#allocation8 + $0xc] sm:$0xf]  ;;  %v772_v6 = vmul.f32 %v716_v48, %v3705_v24  ;;  %v2751_v24 = vld [vmem:[#allocation8 + $0x19c] sm:$0xf0]  ;;  %vm745_vm15 = vmor %vm743_vm11, %vm744_vm12 }
 0x1e3   : > { %v1573_v56 = vpop.f32.mrf.mxu2  ;;  %v1622_v0 = vpop.f32.mrf.mxu3  ;;  %v739_v32 = vmul.f32 %v3924_v41, %v738_v27  ;;  %1663 = vmatpush.bf16.msrb.mxu0 %v2343_v20  ;;  %v2323_v60 = vor.u32 %v2700_v33, %v2320_v23  ;;  %v731_v44 = vsub.f32 1.5, %v730_v55 }
 0x1e4   : > { %v1477_v63 = vpop.f32.mrf.mxu0  ;;  %v1574_v40 = vadd.f32 %v1573_v56, %v3863_v15  ;;  %v1526_v17 = vpop.f32.mrf.mxu1  ;;  %v3953_v8 = vpack.c.bf16 %v845_v16, %v843_v5  ;;  %v3955_v7 = vpack.c.bf16 %v846_v12, %v844_v3  ;;  %v2515_v56 = vor.u32 %v2748_v9, %v2512_v30  ;;  %v2318_v5 = vld [vmem:[#allocation8 + $0x8] sm:$0xf] }
 0x1e5   : > { %v740_v53 = vmul.f32 0.5, %v739_v32  ;;  %v1478_v50 = vadd.f32 %v1477_v63, %v3857_v37  ;;  %v774_v3 = vmul.f32 %v726_v62, %v3661_v38  ;;  %v2510_v12 = vld [vmem:[#allocation8 + $0x188] sm:$0xf]  ;;  %1762 = vmatpush.bf16.msrb.mxu2 %v2323_v60  ;;  %v811_v63 = vmul.f32 %v3613_v46, %v773_v2 }
 0x1e6   : > { %v1623_v28 = vadd.f32 %v1622_v0, %v1574_v40  ;;  %1494 = vmatmul.bf16.gmra.mxu0 %v3953_v8  ;;  %1543 = vmatmul.bf16.gmra.mxu1 %v3955_v7  ;;  %v809_v0 = vmul.f32 %v3613_v46, %v771_v21  ;;  %v810_v39 = vmul.f32 %v3616_v18, %v772_v6 }
 0x1e7   : > { %1592 = vmatmul.bf16.gmra.mxu2 %v3953_v8  ;;  %1641 = vmatmul.bf16.gmra.mxu3 %v3955_v7  ;;  %v741_v49 = vsub.f32 1.5, %v740_v53  ;;  %v1527_v48 = vadd.f32 %v1526_v17, %v1478_v50  ;;  %v2319_v38 = vor.u32 %v2703_v54, %v2318_v5  ;;  %v2511_v14 = vor.u32 %v2751_v24, %v2510_v12  ;;  %v2743_v5 = vld [vmem:[#allocation8 + $0x164] sm:$0xf]  ;;  %v2688_v54 = vld [vmem:[#allocation8 + $0x2f8] sm:$0xf0] }
 0x1e8   : > { %v2055_v10 = vpack.c.bf16 %v1623_v28, %v1525_v42  ;;  %1811 = vmatpush.bf16.msrb.mxu3 %v2515_v56  ;;  %v812_v62 = vmul.f32 %v3616_v18, %v774_v3  ;;  %v847_v42 = vadd.f32 %v3624_v47, %v809_v0  ;;  %v848_v17 = vadd.f32 %v3626_v22, %v810_v39  ;;  %v2496_v3 = vld [vmem:[#allocation8 + $0x178] sm:$0xf0]  ;;  %v2494_v12 = vld [vmem:[#allocation8 + $0x160] sm:$0xf]  ;;  %v2794_v39 = vld [vmem:[#allocation8 + $0x2f4] sm:$0xf0] }
 0x1e9   : > { %1664 = vmatpush.bf16.msrb.mxu0 %v2319_v38  ;;  %1713 = vmatpush.bf16.msrb.mxu1 %v2511_v14  ;;  %v742_v20 = vmul.f32 %v3924_v41, %v741_v49  ;;  %v732_v33 = vmul.f32 %v3911_v45, %v731_v44 }
 0x1ea   : > { %2103 = vst [vmem:[%s3904_s2 + $0x30] sm:$0xff] %v2055_v10  ;;  %v849_v10 = vadd.f32 %v3624_v47, %v811_v63  ;;  %v850_v43 = vadd.f32 %v3626_v22, %v812_v62  ;;  %v2686_v63 = vld [vmem:[#allocation8 + $0x2e0] sm:$0xf] }
 0x1eb   : > { %v1575_v27 = vpop.f32.mrf.mxu2  ;;  %v1624_v25 = vpop.f32.mrf.mxu3  ;;  %v746_v30 = vsel %vm745_vm15, %v3924_v41, %v742_v20 }
 0x1ec   : > { %v1480_v16 = vpop.f32.mrf.mxu0  ;;  %v1576_v40 = vadd.f32 %v1575_v27, %v3863_v15  ;;  %v1529_v36 = vpop.f32.mrf.mxu1  ;;  %v3991_v53 = vpack.c.bf16 %v849_v10, %v847_v42  ;;  %v3995_v9 = vpack.c.bf16 %v850_v43, %v848_v17  ;;  %v736_v27 = vsel %vm735_vm0, %v3911_v45, %v732_v33 }
 0x1ed   : > { %v1481_v21 = vadd.f32 %v1480_v16, %v3857_v37  ;;  %v777_v56 = vmul.f32 %v746_v30, %v3722_v26  ;;  %v778_v41 = vmul.f32 %v746_v30, %v3725_v29  ;;  %v2499_v16 = vor.u32 %v2743_v5, %v2496_v3  ;;  %v2470_v5 = vld [vmem:[#allocation8 + $0x130] sm:$0xf] }
 0x1ee   : > { %v1625_v32 = vadd.f32 %v1624_v25, %v1576_v40  ;;  %v2791_v25 = vld [vmem:[#allocation8 + $0x2e4] sm:$0xf]  ;;  %v775_v24 = vmul.f32 %v736_v27, %v3691_v51  ;;  %v2746_v40 = vld [vmem:[#allocation8 + $0x174] sm:$0xf0]  ;;  %v776_v49 = vmul.f32 %v736_v27, %v3694_v52  ;;  %v2785_v27 = vld [vmem:[#allocation8 + $0x2b4] sm:$0xf] }
 0x1ef   : > { %v1530_v55 = vadd.f32 %v1529_v36, %v1481_v21  ;;  %v2691_v26 = vor.u32 %v2791_v25, %v2688_v54  ;;  %1951 = vmatpush.bf16.msra.mxu2 %v2499_v16  ;;  %v2495_v29 = vor.u32 %v2746_v40, %v2494_v12  ;;  %v2687_v36 = vor.u32 %v2794_v39, %v2686_v63  ;;  %v2788_v16 = vld [vmem:[#allocation8 + $0x2c4] sm:$0xf0] }
 0x1f0   : > { %v2058_v28 = vpack.c.bf16 %v1625_v32, %v1527_v48  ;;  %v815_v38 = vmul.f32 %v3613_v46, %v777_v56  ;;  %v816_v51 = vmul.f32 %v3616_v18, %v778_v41  ;;  %v813_v42 = vmul.f32 %v3613_v46, %v775_v24  ;;  %v2740_v41 = vld [vmem:[#allocation8 + $0x144] sm:$0xf0] }
 0x1f1   : > { %2000 = vmatpush.bf16.msra.mxu3 %v2691_v26  ;;  %1853 = vmatpush.bf16.msra.mxu0 %v2495_v29  ;;  %v814_v52 = vmul.f32 %v3616_v18, %v776_v49  ;;  %v2471_v12 = vor.u32 %v2740_v41, %v2470_v5  ;;  %v2731_v49 = vld [vmem:[#allocation8 + $0x104] sm:$0xf] }
 0x1f2   : > { %2106 = vst [vmem:[%s3904_s2 + $0x48] sm:$0xff] %v2058_v28  ;;  %1902 = vmatpush.bf16.msra.mxu1 %v2687_v36  ;;  %v853_v17 = vadd.f32 %v3624_v47, %v815_v38  ;;  %v854_v20 = vadd.f32 %v3626_v22, %v816_v51  ;;  %v851_v43 = vadd.f32 %v3624_v47, %v813_v42  ;;  %v2737_v47 = vld [vmem:[#allocation8 + $0x134] sm:$0xf]  ;;  %v2640_v36 = vld [vmem:[#allocation8 + $0x298] sm:$0xf0] }
 0x1f3   : > { %v1578_v61 = vpop.f32.mrf.mxu2  ;;  %v1627_v2 = vpop.f32.mrf.mxu3  ;;  %v852_v33 = vadd.f32 %v3626_v22, %v814_v52  ;;  %v2472_v22 = vld [vmem:[#allocation8 + $0x148] sm:$0xf0]  ;;  %v2446_v38 = vld [vmem:[#allocation8 + $0x100] sm:$0xf]  ;;  %v2782_v42 = vld [vmem:[#allocation8 + $0x294] sm:$0xf0] }
 0x1f4   : > { %v1579_v23 = vadd.f32 %v1578_v61, %v3863_v15  ;;  %v1482_v6 = vpop.f32.mrf.mxu0  ;;  %v1531_v4 = vpop.f32.mrf.mxu1  ;;  %v2475_v56 = vor.u32 %v2737_v47, %v2472_v22  ;;  %v2767_v47 = vld [vmem:[#allocation8 + $0x224] sm:$0xf] }
 0x1f5   : > { %v1483_v45 = vadd.f32 %v1482_v6, %v3857_v37  ;;  %v4023_v18 = vpack.c.bf16 %v854_v20, %v852_v33  ;;  %1854 = vmatpush.bf16.msra.mxu0 %v2471_v12  ;;  %v2773_v20 = vld [vmem:[#allocation8 + $0x254] sm:$0xf] }
 0x1f6   : > { %v1628_v50 = vadd.f32 %v1627_v2, %v1579_v23  ;;  %1499 = vmatmul.bf16.gmra.mxu0 %v3991_v53  ;;  %1548 = vmatmul.bf16.gmra.mxu1 %v3995_v9  ;;  %v4021_v2 = vpack.c.bf16 %v853_v17, %v851_v43  ;;  %v2424_v17 = vld [vmem:[#allocation8 + $0xe8] sm:$0xf0]  ;;  %v2728_v43 = vld [vmem:[#allocation8 + $0xe4] sm:$0xf0]  ;;  %v2761_v12 = vld [vmem:[#allocation8 + $0x1f4] sm:$0xf] }
 0x1f7   : > { %1597 = vmatmul.bf16.gmra.mxu2 %v3991_v53  ;;  %1646 = vmatmul.bf16.gmra.mxu3 %v3995_v9  ;;  %v1532_v62 = vadd.f32 %v1531_v4, %v1483_v45  ;;  %v2664_v4 = vld [vmem:[#allocation8 + $0x2c8] sm:$0xf0]  ;;  %v2662_v45 = vld [vmem:[#allocation8 + $0x2b0] sm:$0xf] }
 0x1f8   : > { %v2061_v60 = vpack.c.bf16 %v1628_v50, %v1530_v55  ;;  %v2667_v25 = vor.u32 %v2785_v27, %v2664_v4  ;;  %1952 = vmatpush.bf16.msra.mxu2 %v2475_v56  ;;  %v2663_v24 = vor.u32 %v2788_v16, %v2662_v45  ;;  %v2592_v27 = vld [vmem:[#allocation8 + $0x238] sm:$0xf0]  ;;  %v2722_v56 = vld [vmem:[#allocation8 + $0xb4] sm:$0xf0]  ;;  %v2713_v16 = vld [vmem:[#allocation8 + $0x74] sm:$0xf] }
 0x1f9   : > { %v2595_v4 = vor.u32 %v2767_v47, %v2592_v27  ;;  %v2350_v47 = vld [vmem:[#allocation8 + $0x40] sm:$0xf] }
 0x1fa   : > { %2109 = vst [vmem:[%s3904_s2 + $0x60] sm:$0xff] %v2061_v60  ;;  %2001 = vmatpush.bf16.msra.mxu3 %v2667_v25  ;;  %1903 = vmatpush.bf16.msra.mxu1 %v2663_v24  ;;  %v2770_v25 = vld [vmem:[#allocation8 + $0x234] sm:$0xf0]  ;;  %v2542_v27 = vld [vmem:[#allocation8 + $0x1c0] sm:$0xf] }
 0x1fb   : > { %v1580_v0 = vpop.f32.mrf.mxu2  ;;  %v1629_v32 = vpop.f32.mrf.mxu3 }
 0x1fc   : > { %v1581_v48 = vadd.f32 %v1580_v0, %v3863_v15  ;;  %v1485_v14 = vpop.f32.mrf.mxu0  ;;  %v1534_v10 = vpop.f32.mrf.mxu1 }
 0x1fd   : > { %v1486_v21 = vadd.f32 %v1485_v14, %v3857_v37  ;;  %v2734_v14 = vld [vmem:[#allocation8 + $0x114] sm:$0xf0] }
 0x1fe   : > { %v1630_v44 = vadd.f32 %v1629_v32, %v1581_v48  ;;  %v2448_v48 = vld [vmem:[#allocation8 + $0x118] sm:$0xf0]  ;;  %v2779_v32 = vld [vmem:[#allocation8 + $0x284] sm:$0xf] }
 0x1ff   : > { %v1535_v6 = vadd.f32 %v1534_v10, %v1486_v21  ;;  %v2451_v29 = vor.u32 %v2731_v49, %v2448_v48  ;;  %v2643_v51 = vor.u32 %v2779_v32, %v2640_v36  ;;  %v2616_v10 = vld [vmem:[#allocation8 + $0x268] sm:$0xf0] }
 0x200   : > { %v2064_v28 = vpack.c.bf16 %v1630_v44, %v1532_v62  ;;  %v2447_v62 = vor.u32 %v2734_v14, %v2446_v38  ;;  %v2638_v44 = vld [vmem:[#allocation8 + $0x280] sm:$0xf]  ;;  %v2619_v33 = vor.u32 %v2773_v20, %v2616_v10  ;;  %v2374_v38 = vld [vmem:[#allocation8 + $0x70] sm:$0xf]  ;;  %v2716_v14 = vld [vmem:[#allocation8 + $0x84] sm:$0xf0] }
 0x201   : > { %1953 = vmatpush.bf16.msra.mxu2 %v2451_v29  ;;  %v2639_v52 = vor.u32 %v2782_v42, %v2638_v44  ;;  %2002 = vmatpush.bf16.msra.mxu3 %v2643_v51  ;;  %v2566_v51 = vld [vmem:[#allocation8 + $0x1f0] sm:$0xf]  ;;  %v2375_v44 = vor.u32 %v2716_v14, %v2374_v38  ;;  %v2764_v42 = vld [vmem:[#allocation8 + $0x204] sm:$0xf0] }
 0x202   : > { %2112 = vst [vmem:[%s3904_s2 + $0x78] sm:$0xff] %v2064_v28  ;;  %1855 = vmatpush.bf16.msra.mxu0 %v2447_v62  ;;  %v2725_v28 = vld [vmem:[#allocation8 + $0xd4] sm:$0xf]  ;;  %v2704_v38 = vld [vmem:[#allocation8 + $0x24] sm:$0xf0] }
 0x203   : > { %v1583_v61 = vpop.f32.mrf.mxu2  ;;  %v1632_v46 = vpop.f32.mrf.mxu3  ;;  %1904 = vmatpush.bf16.msra.mxu1 %v2639_v52  ;;  %v2427_v21 = vor.u32 %v2725_v28, %v2424_v17  ;;  %v2567_v52 = vor.u32 %v2764_v42, %v2566_v51  ;;  %v2752_v42 = vld [vmem:[#allocation8 + $0x1a4] sm:$0xf0] }
 0x204   : > { %v1584_v23 = vadd.f32 %v1583_v61, %v3863_v15  ;;  %v1487_v55 = vpop.f32.mrf.mxu0  ;;  %v1536_v0 = vpop.f32.mrf.mxu1  ;;  %v2422_v61 = vld [vmem:[#allocation8 + $0xd0] sm:$0xf] }
 0x205   : > { %v1488_v60 = vadd.f32 %v1487_v55, %v3857_v37  ;;  %1954 = vmatpush.bf16.msra.mxu2 %v2427_v21  ;;  %2003 = vmatpush.bf16.msra.mxu3 %v2619_v33  ;;  %v2719_v55 = vld [vmem:[#allocation8 + $0xa4] sm:$0xf] }
 0x206   : > { %v1633_v30 = vadd.f32 %v1632_v46, %v1584_v23  ;;  %1504 = vmatmul.bf16.gmra.mxu0 %v4021_v2  ;;  %1553 = vmatmul.bf16.gmra.mxu1 %v4023_v18  ;;  %v2423_v23 = vor.u32 %v2728_v43, %v2422_v61  ;;  %v2614_v46 = vld [vmem:[#allocation8 + $0x250] sm:$0xf]  ;;  %v2707_v33 = vld [vmem:[#allocation8 + $0x44] sm:$0xf] }
 0x207   : > { %1602 = vmatmul.bf16.gmra.mxu2 %v4021_v2  ;;  %1651 = vmatmul.bf16.gmra.mxu3 %v4023_v18  ;;  %v1537_v40 = vadd.f32 %v1536_v0, %v1488_v60  ;;  %v2398_v60 = vld [vmem:[#allocation8 + $0xa0] sm:$0xf]  ;;  %v2568_v0 = vld [vmem:[#allocation8 + $0x208] sm:$0xf0] }
 0x208   : > { %v2067_v50 = vpack.c.bf16 %v1633_v30, %v1535_v6  ;;  %v2776_v6 = vld [vmem:[#allocation8 + $0x264] sm:$0xf0]  ;;  %1856 = vmatpush.bf16.msra.mxu0 %v2423_v23  ;;  %v2399_v5 = vor.u32 %v2722_v56, %v2398_v60  ;;  %v2352_v23 = vld [vmem:[#allocation8 + $0x58] sm:$0xf0]  ;;  %v2758_v56 = vld [vmem:[#allocation8 + $0x1d4] sm:$0xf0] }
 0x209   : > { %v2615_v30 = vor.u32 %v2776_v6, %v2614_v46  ;;  %2004 = vmatpush.bf16.msra.mxu3 %v2595_v4  ;;  %v2755_v46 = vld [vmem:[#allocation8 + $0x1c4] sm:$0xf] }
 0x20a   : > { %2115 = vst [vmem:[%s3904_s2 + $0x90] sm:$0xff] %v2067_v50  ;;  %v2400_v50 = vld [vmem:[#allocation8 + $0xb8] sm:$0xf0] }
 0x20b   : > { %v1585_v3 = vpop.f32.mrf.mxu2  ;;  %v1634_v26 = vpop.f32.mrf.mxu3  ;;  %1905 = vmatpush.bf16.msra.mxu1 %v2615_v30  ;;  %v2403_v22 = vor.u32 %v2719_v55, %v2400_v50  ;;  %v2355_v30 = vor.u32 %v2707_v33, %v2352_v23  ;;  %v2544_v55 = vld [vmem:[#allocation8 + $0x1d8] sm:$0xf0] }
 0x20c   : > { %v1586_v54 = vadd.f32 %v1585_v3, %v3863_v15  ;;  %v2590_v3 = vld [vmem:[#allocation8 + $0x220] sm:$0xf]  ;;  %1857 = vmatpush.bf16.msra.mxu0 %v2399_v5  ;;  %v2547_v50 = vor.u32 %v2755_v46, %v2544_v55 }
 0x20d   : > { %1955 = vmatpush.bf16.msra.mxu2 %v2403_v22  ;;  %v2591_v41 = vor.u32 %v2770_v25, %v2590_v3  ;;  %v2710_v22 = vld [vmem:[#allocation8 + $0x54] sm:$0xf0]  ;;  %v2543_v3 = vor.u32 %v2758_v56, %v2542_v27 }
 0x20e   : > { %v1635_v63 = vadd.f32 %v1634_v26, %v1586_v54  ;;  %v2376_v54 = vld [vmem:[#allocation8 + $0x88] sm:$0xf0]  ;;  %v2571_v26 = vor.u32 %v2761_v12, %v2568_v0  ;;  %v2351_v60 = vor.u32 %v2710_v22, %v2350_v47 }
 0x20f   : > { %1906 = vmatpush.bf16.msra.mxu1 %v2591_v41  ;;  %v2379_v24 = vor.u32 %v2713_v16, %v2376_v54  ;;  %v2701_v41 = vld [vmem:[#allocation8 + $0x14] sm:$0xf]  ;;  %v2520_v0 = vld [vmem:[#allocation8 + $0x1a8] sm:$0xf0] }
 0x210   : > { %v2070_v39 = vpack.c.bf16 %v1635_v63, %v1537_v40  ;;  %2005 = vmatpush.bf16.msra.mxu3 %v2571_v26  ;;  %1858 = vmatpush.bf16.msra.mxu0 %v2375_v44  ;;  %v2749_v16 = vld [vmem:[#allocation8 + $0x194] sm:$0xf]  ;;  %v2518_v44 = vld [vmem:[#allocation8 + $0x190] sm:$0xf] }
 0x211   : > { %1956 = vmatpush.bf16.msra.mxu2 %v2379_v24 }
 0x212   : > { %2118 = vst [vmem:[%s3904_s2 + $0xa8] sm:$0xff] %v2070_v39 }
 0x213   : > { %1907 = vmatpush.bf16.msra.mxu1 %v2567_v52 }
 0x214   : > { %2006 = vmatpush.bf16.msra.mxu3 %v2547_v50  ;;  %1859 = vmatpush.bf16.msra.mxu0 %v2351_v60 }
 0x215   : > { %1957 = vmatpush.bf16.msra.mxu2 %v2355_v30 }
 0x216   : > { %1665 = vmatmul.bf16.vlgmr.msrb.gmra.mxu0 %v3656_v1  ;;  %1714 = vmatmul.bf16.vlgmr.msrb.gmra.mxu1 %v3658_v35 }
 0x217   : > { %1763 = vmatmul.bf16.vlgmr.msrb.gmra.mxu2 %v3656_v1  ;;  %1812 = vmatmul.bf16.vlgmr.msrb.gmra.mxu3 %v3658_v35 }
 0x218   : > { %1908 = vmatpush.bf16.msra.mxu1 %v2543_v3 }
 0x226   : > { %1670 = vmatmul.bf16.gmra.mxu0 %v3754_v13  ;;  %1719 = vmatmul.bf16.gmra.mxu1 %v3756_v58 }
 0x227   : > { %1768 = vmatmul.bf16.gmra.mxu2 %v3754_v13  ;;  %1817 = vmatmul.bf16.gmra.mxu3 %v3756_v58 }
 0x236   : > { %1675 = vmatmul.bf16.gmra.mxu0 %v3788_v11  ;;  %1724 = vmatmul.bf16.gmra.mxu1 %v3790_v19 }
 0x237   : > { %1773 = vmatmul.bf16.gmra.mxu2 %v3788_v11  ;;  %1822 = vmatmul.bf16.gmra.mxu3 %v3790_v19 }
 0x246   : > { %1680 = vmatmul.bf16.gmra.mxu0 %v3810_v57  ;;  %1729 = vmatmul.bf16.gmra.mxu1 %v3812_v31 }
 0x247   : > { %1778 = vmatmul.bf16.gmra.mxu2 %v3810_v57  ;;  %1827 = vmatmul.bf16.gmra.mxu3 %v3812_v31 }
 0x248   : > { %v1490_v45 = vpop.f32.mrf.mxu0  ;;  %v1539_v63 = vpop.f32.mrf.mxu1 }
 0x249   : > { %v1491_v40 = vadd.f32 %v1490_v45, %v3857_v37  ;;  %v2328_v45 = vld [vmem:[#allocation8 + $0x28] sm:$0xf0] }
 0x24a   : > { %v2331_v24 = vor.u32 %v2701_v41, %v2328_v45 }
 0x24b   : > { %v1540_v32 = vadd.f32 %v1539_v63, %v1491_v40 }
 0x24c   : > { %1958 = vmatpush.bf16.msra.mxu2 %v2331_v24 }
 0x24f   : > { %v1588_v39 = vpop.f32.mrf.mxu2  ;;  %v1637_v48 = vpop.f32.mrf.mxu3 }
 0x250   : > { %v1589_v49 = vadd.f32 %v1588_v39, %v3863_v15  ;;  %v1492_v36 = vpop.f32.mrf.mxu0  ;;  %v1541_v21 = vpop.f32.mrf.mxu1  ;;  %v2523_v39 = vor.u32 %v2749_v16, %v2520_v0 }
 0x251   : > { %v1493_v28 = vadd.f32 %v1492_v36, %v3857_v37  ;;  %v2326_v36 = vld [vmem:[#allocation8 + $0x10] sm:$0xf] }
 0x252   : > { %v1638_v29 = vadd.f32 %v1637_v48, %v1589_v49  ;;  %2007 = vmatpush.bf16.msra.mxu3 %v2523_v39 }
 0x253   : > { %v1542_v61 = vadd.f32 %v1541_v21, %v1493_v28 }
 0x254   : > { %v2073_v62 = vpack.c.bf16 %v1638_v29, %v1540_v32 }
 0x256   : > { %2121 = vst [vmem:[%s3904_s2 + $0xc0] sm:$0xff] %v2073_v62  ;;  %1685 = vmatmul.bf16.gmra.mxu0 %v3841_v59  ;;  %1734 = vmatmul.bf16.gmra.mxu1 %v3843_v34  ;;  %v2327_v62 = vor.u32 %v2704_v38, %v2326_v36 }
 0x257   : > { %v1590_v17 = vpop.f32.mrf.mxu2  ;;  %1783 = vmatmul.bf16.gmra.mxu2 %v3841_v59  ;;  %1832 = vmatmul.bf16.gmra.mxu3 %v3843_v34  ;;  %v1639_v10 = vpop.f32.mrf.mxu3 }
 0x258   : > { %v1591_v20 = vadd.f32 %v1590_v17, %v3863_v15  ;;  %1860 = vmatpush.bf16.msra.mxu0 %v2327_v62 }
 0x25a   : > { %v1640_v43 = vadd.f32 %v1639_v10, %v1591_v20  ;;  %v2519_v20 = vor.u32 %v2752_v42, %v2518_v44 }
 0x25c   : > { %v2076_v6 = vpack.c.bf16 %v1640_v43, %v1542_v61  ;;  %1909 = vmatpush.bf16.msra.mxu1 %v2519_v20 }
 0x25e   : > { %2124 = vst [vmem:[%s3904_s2 + $0xd8] sm:$0xff] %v2076_v6 }
 0x263   : > { %v1495_v4 = vpop.f32.mrf.mxu0  ;;  %v1544_v5 = vpop.f32.mrf.mxu1 }
 0x264   : > { %v1496_v25 = vadd.f32 %v1495_v4, %v3857_v37 }
 0x266   : > { %1690 = vmatmul.bf16.gmra.mxu0 %v3953_v8  ;;  %1739 = vmatmul.bf16.gmra.mxu1 %v3955_v7  ;;  %v1545_v49 = vadd.f32 %v1544_v5, %v1496_v25 }
 0x267   : > { %1788 = vmatmul.bf16.gmra.mxu2 %v3953_v8  ;;  %1837 = vmatmul.bf16.gmra.mxu3 %v3955_v7 }
 0x26a   : > { %v1593_v54 = vpop.f32.mrf.mxu2  ;;  %v1642_v12 = vpop.f32.mrf.mxu3 }
 0x26b   : > { %v1594_v26 = vadd.f32 %v1593_v54, %v3863_v15  ;;  %v1497_v40 = vpop.f32.mrf.mxu0  ;;  %v1546_v63 = vpop.f32.mrf.mxu1 }
 0x26c   : > { %v1498_v29 = vadd.f32 %v1497_v40, %v3857_v37 }
 0x26d   : > { %v1643_v48 = vadd.f32 %v1642_v12, %v1594_v26 }
 0x26e   : > { %v1547_v21 = vadd.f32 %v1546_v63, %v1498_v29 }
 0x26f   : > { %v2079_v32 = vpack.c.bf16 %v1643_v48, %v1545_v49 }
 0x271   : > { %2127 = vst [vmem:[%s3904_s2 + $0xf0] sm:$0xff] %v2079_v32 }
 0x272   : > { %v1595_v14 = vpop.f32.mrf.mxu2  ;;  %v1644_v51 = vpop.f32.mrf.mxu3 }
 0x273   : > { %v1596_v52 = vadd.f32 %v1595_v14, %v3863_v15  ;;  %v1500_v28 = vpop.f32.mrf.mxu0  ;;  %v1549_v17 = vpop.f32.mrf.mxu1 }
 0x274   : > { %v1501_v43 = vadd.f32 %v1500_v28, %v3857_v37 }
 0x275   : > { %v1645_v10 = vadd.f32 %v1644_v51, %v1596_v52  ;;  %v4088_v51 = vld [vmem:[#allocation10] sm:$0x3f] }
 0x276   : > { %1695 = vmatmul.bf16.gmra.mxu0 %v3991_v53  ;;  %1744 = vmatmul.bf16.gmra.mxu1 %v3995_v9  ;;  %v1550_v55 = vadd.f32 %v1549_v17, %v1501_v43  ;;  %v4091_v62 = vperm.slane %v4088_v51, 2 }
 0x277   : > { %v2082_v61 = vpack.c.bf16 %v1645_v10, %v1547_v21  ;;  %1793 = vmatmul.bf16.gmra.mxu2 %v3991_v53  ;;  %1842 = vmatmul.bf16.gmra.mxu3 %v3995_v9 }
 0x279   : > { %2130 = vst [vmem:[%s3904_s2 + $0x108] sm:$0xff] %v2082_v61 }
 0x27a   : > { %v1598_v33 = vpop.f32.mrf.mxu2  ;;  %v1647_v23 = vpop.f32.mrf.mxu3 }
 0x27b   : > { %v1599_v46 = vadd.f32 %v1598_v33, %v3863_v15  ;;  %v1502_v6 = vpop.f32.mrf.mxu0  ;;  %v1551_v30 = vpop.f32.mrf.mxu1 }
 0x27c   : > { %v1503_v22 = vadd.f32 %v1502_v6, %v3857_v37 }
 0x27d   : > { %v1648_v50 = vadd.f32 %v1647_v23, %v1599_v46 }
 0x27e   : > { %v1552_v3 = vadd.f32 %v1551_v30, %v1503_v22 }
 0x27f   : > { %v2085_v47 = vpack.c.bf16 %v1648_v50, %v1550_v55 }
 0x281   : > { %2133 = vst [vmem:[%s3904_s2 + $0x120] sm:$0xff] %v2085_v47 }
 0x282   : > { %v1600_v27 = vpop.f32.mrf.mxu2  ;;  %v1649_v60 = vpop.f32.mrf.mxu3 }
 0x283   : > { %v1601_v56 = vadd.f32 %v1600_v27, %v3863_v15  ;;  %v1505_v4 = vpop.f32.mrf.mxu0  ;;  %v1554_v5 = vpop.f32.mrf.mxu1 }
 0x284   : > { %v1506_v45 = vadd.f32 %v1505_v4, %v3857_v37 }
 0x285   : > { %v1650_v25 = vadd.f32 %v1649_v60, %v1601_v56 }
 0x286   : > { %1700 = vmatmul.bf16.gmra.mxu0 %v4021_v2  ;;  %1749 = vmatmul.bf16.gmra.mxu1 %v4023_v18  ;;  %v1555_v26 = vadd.f32 %v1554_v5, %v1506_v45 }
 0x287   : > { %v2088_v41 = vpack.c.bf16 %v1650_v25, %v1552_v3  ;;  %1798 = vmatmul.bf16.gmra.mxu2 %v4021_v2  ;;  %1847 = vmatmul.bf16.gmra.mxu3 %v4023_v18 }
 0x289   : > { %2136 = vst [vmem:[%s3904_s2 + $0x138] sm:$0xff] %v2088_v41 }
 0x28a   : > { %v1603_v16 = vpop.f32.mrf.mxu2  ;;  %v1652_v54 = vpop.f32.mrf.mxu3 }
 0x28b   : > { %v1604_v12 = vadd.f32 %v1603_v16, %v3863_v15  ;;  %v1507_v24 = vpop.f32.mrf.mxu0  ;;  %v1556_v0 = vpop.f32.mrf.mxu1 }
 0x28c   : > { %v1508_v39 = vadd.f32 %v1507_v24, %v3857_v37 }
 0x28d   : > { %v1653_v40 = vadd.f32 %v1652_v54, %v1604_v12 }
 0x28e   : > { %v1557_v38 = vadd.f32 %v1556_v0, %v1508_v39 }
 0x28f   : > { %v2091_v63 = vpack.c.bf16 %v1653_v40, %v1555_v26 }
 0x291   : > { %2139 = vst [vmem:[%s3904_s2 + $0x150] sm:$0xff] %v2091_v63 }
 0x292   : > { %v1605_v49 = vpop.f32.mrf.mxu2  ;;  %v1654_v48 = vpop.f32.mrf.mxu3 }
 0x293   : > { %v1606_v32 = vadd.f32 %v1605_v49, %v3863_v15  ;;  %v1666_v29 = vpop.f32.mrf.mxu0  ;;  %v1715_v36 = vpop.f32.mrf.mxu1  ;;  %v4098_v15 = vperm.slane %v4088_v51, 3 }
 0x294   : > { %v1667_v44 = vadd.f32 %v1666_v29, %v4091_v62 }
 0x295   : > { %v1655_v14 = vadd.f32 %v1654_v48, %v1606_v32 }
 0x296   : > { %1861 = vmatmul.bf16.vlgmr.msra.gmra.mxu0 %v3656_v1  ;;  %1910 = vmatmul.bf16.vlgmr.msra.gmra.mxu1 %v3658_v35  ;;  %v1716_v21 = vadd.f32 %v1715_v36, %v1667_v44 }
 0x297   : > { %v2094_v37 = vpack.c.bf16 %v1655_v14, %v1557_v38  ;;  %1959 = vmatmul.bf16.vlgmr.msra.gmra.mxu2 %v3656_v1  ;;  %2008 = vmatmul.bf16.vlgmr.msra.gmra.mxu3 %v3658_v35 }
 0x299   : > { %2142 = vst [vmem:[%s3904_s2 + $0x168] sm:$0xff] %v2094_v37 }
 0x29a   : > { %v1764_v42 = vpop.f32.mrf.mxu2  ;;  %v1813_v52 = vpop.f32.mrf.mxu3 }
 0x29b   : > { %v1765_v28 = vadd.f32 %v1764_v42, %v4098_v15  ;;  %v1668_v17 = vpop.f32.mrf.mxu0  ;;  %v1717_v20 = vpop.f32.mrf.mxu1 }
 0x29c   : > { %v1669_v1 = vadd.f32 %v1668_v17, %v4091_v62 }
 0x29d   : > { %v1814_v10 = vadd.f32 %v1813_v52, %v1765_v28 }
 0x29e   : > { %v1718_v6 = vadd.f32 %v1717_v20, %v1669_v1 }
 0x29f   : > { %v2050_v61 = vpack.c.bf16 %v1814_v10, %v1716_v21 }
 0x2a1   : > { %2098 = vst [vmem:[%s3904_s2 + $0x8] sm:$0xff] %v2050_v61 }
 0x2a2   : > { %v1766_v35 = vpop.f32.mrf.mxu2  ;;  %v1815_v43 = vpop.f32.mrf.mxu3 }
 0x2a3   : > { %v1767_v33 = vadd.f32 %v1766_v35, %v4098_v15  ;;  %v1671_v23 = vpop.f32.mrf.mxu0  ;;  %v1720_v46 = vpop.f32.mrf.mxu1 }
 0x2a4   : > { %v1672_v50 = vadd.f32 %v1671_v23, %v4091_v62 }
 0x2a5   : > { %v1816_v30 = vadd.f32 %v1815_v43, %v1767_v33 }
 0x2a6   : > { %1866 = vmatmul.bf16.gmra.mxu0 %v3754_v13  ;;  %1915 = vmatmul.bf16.gmra.mxu1 %v3756_v58  ;;  %v1721_v4 = vadd.f32 %v1720_v46, %v1672_v50 }
 0x2a7   : > { %v2053_v55 = vpack.c.bf16 %v1816_v30, %v1718_v6  ;;  %1964 = vmatmul.bf16.gmra.mxu2 %v3754_v13  ;;  %2013 = vmatmul.bf16.gmra.mxu3 %v3756_v58 }
 0x2a9   : > { %2101 = vst [vmem:[%s3904_s2 + $0x20] sm:$0xff] %v2053_v55 }
 0x2aa   : > { %v1769_v47 = vpop.f32.mrf.mxu2  ;;  %v1818_v22 = vpop.f32.mrf.mxu3 }
 0x2ab   : > { %v1770_v27 = vadd.f32 %v1769_v47, %v4098_v15  ;;  %v1673_v60 = vpop.f32.mrf.mxu0  ;;  %v1722_v56 = vpop.f32.mrf.mxu1 }
 0x2ac   : > { %v1674_v25 = vadd.f32 %v1673_v60, %v4091_v62 }
 0x2ad   : > { %v1819_v5 = vadd.f32 %v1818_v22, %v1770_v27 }
 0x2ae   : > { %v1723_v54 = vadd.f32 %v1722_v56, %v1674_v25 }
 0x2af   : > { %v2056_v3 = vpack.c.bf16 %v1819_v5, %v1721_v4 }
 0x2b1   : > { %2104 = vst [vmem:[%s3904_s2 + $0x38] sm:$0xff] %v2056_v3 }
 0x2b2   : > { %v1771_v41 = vpop.f32.mrf.mxu2  ;;  %v1820_v13 = vpop.f32.mrf.mxu3 }
 0x2b3   : > { %v1772_v58 = vadd.f32 %v1771_v41, %v4098_v15  ;;  %v1676_v45 = vpop.f32.mrf.mxu0  ;;  %v1725_v16 = vpop.f32.mrf.mxu1 }
 0x2b4   : > { %v1677_v0 = vadd.f32 %v1676_v45, %v4091_v62 }
 0x2b5   : > { %v1821_v12 = vadd.f32 %v1820_v13, %v1772_v58 }
 0x2b6   : > { %1871 = vmatmul.bf16.gmra.mxu0 %v3788_v11  ;;  %1920 = vmatmul.bf16.gmra.mxu1 %v3790_v19  ;;  %v1726_v48 = vadd.f32 %v1725_v16, %v1677_v0 }
 0x2b7   : > { %v2059_v24 = vpack.c.bf16 %v1821_v12, %v1723_v54  ;;  %1969 = vmatmul.bf16.gmra.mxu2 %v3788_v11  ;;  %2018 = vmatmul.bf16.gmra.mxu3 %v3790_v19 }
 0x2b9   : > { %2107 = vst [vmem:[%s3904_s2 + $0x50] sm:$0xff] %v2059_v24 }
 0x2ba   : > { %v1774_v26 = vpop.f32.mrf.mxu2  ;;  %v1823_v40 = vpop.f32.mrf.mxu3 }
 0x2bb   : > { %v1775_v63 = vadd.f32 %v1774_v26, %v4098_v15  ;;  %v1678_v39 = vpop.f32.mrf.mxu0  ;;  %v1727_v49 = vpop.f32.mrf.mxu1 }
 0x2bc   : > { %v1679_v36 = vadd.f32 %v1678_v39, %v4091_v62 }
 0x2bd   : > { %v1824_v32 = vadd.f32 %v1823_v40, %v1775_v63 }
 0x2be   : > { %v1728_v44 = vadd.f32 %v1727_v49, %v1679_v36 }
 0x2bf   : > { %v2062_v29 = vpack.c.bf16 %v1824_v32, %v1726_v48 }
 0x2c1   : > { %2110 = vst [vmem:[%s3904_s2 + $0x68] sm:$0xff] %v2062_v29 }
 0x2c2   : > { %v1776_v38 = vpop.f32.mrf.mxu2  ;;  %v1825_v11 = vpop.f32.mrf.mxu3 }
 0x2c3   : > { %v1777_v19 = vadd.f32 %v1776_v38, %v4098_v15  ;;  %v1681_v14 = vpop.f32.mrf.mxu0  ;;  %v1730_v37 = vpop.f32.mrf.mxu1 }
 0x2c4   : > { %v1682_v28 = vadd.f32 %v1681_v14, %v4091_v62 }
 0x2c5   : > { %v1826_v42 = vadd.f32 %v1825_v11, %v1777_v19 }
 0x2c6   : > { %1876 = vmatmul.bf16.gmra.mxu0 %v3810_v57  ;;  %1925 = vmatmul.bf16.gmra.mxu1 %v3812_v31  ;;  %v1731_v1 = vadd.f32 %v1730_v37, %v1682_v28 }
 0x2c7   : > { %v2065_v52 = vpack.c.bf16 %v1826_v42, %v1728_v44  ;;  %1974 = vmatmul.bf16.gmra.mxu2 %v3810_v57  ;;  %2023 = vmatmul.bf16.gmra.mxu3 %v3812_v31 }
 0x2c9   : > { %2113 = vst [vmem:[%s3904_s2 + $0x80] sm:$0xff] %v2065_v52 }
 0x2ca   : > { %v1779_v17 = vpop.f32.mrf.mxu2  ;;  %v1828_v20 = vpop.f32.mrf.mxu3 }
 0x2cb   : > { %v1780_v21 = vadd.f32 %v1779_v17, %v4098_v15  ;;  %v1683_v10 = vpop.f32.mrf.mxu0  ;;  %v1732_v61 = vpop.f32.mrf.mxu1 }
 0x2cc   : > { %v1684_v33 = vadd.f32 %v1683_v10, %v4091_v62 }
 0x2cd   : > { %v1829_v35 = vadd.f32 %v1828_v20, %v1780_v21 }
 0x2ce   : > { %v1733_v30 = vadd.f32 %v1732_v61, %v1684_v33 }
 0x2cf   : > { %v2068_v43 = vpack.c.bf16 %v1829_v35, %v1731_v1 }
 0x2d1   : > { %2116 = vst [vmem:[%s3904_s2 + $0x98] sm:$0xff] %v2068_v43 }
 0x2d2   : > { %v1781_v23 = vpop.f32.mrf.mxu2  ;;  %v1830_v57 = vpop.f32.mrf.mxu3 }
 0x2d3   : > { %v1782_v31 = vadd.f32 %v1781_v23, %v4098_v15  ;;  %v1686_v46 = vpop.f32.mrf.mxu0  ;;  %v1735_v6 = vpop.f32.mrf.mxu1 }
 0x2d4   : > { %v1687_v47 = vadd.f32 %v1686_v46, %v4091_v62 }
 0x2d5   : > { %v1831_v55 = vadd.f32 %v1830_v57, %v1782_v31 }
 0x2d6   : > { %1881 = vmatmul.bf16.gmra.mxu0 %v3841_v59  ;;  %1930 = vmatmul.bf16.gmra.mxu1 %v3843_v34  ;;  %v1736_v5 = vadd.f32 %v1735_v6, %v1687_v47 }
 0x2d7   : > { %v2071_v50 = vpack.c.bf16 %v1831_v55, %v1733_v30  ;;  %1979 = vmatmul.bf16.gmra.mxu2 %v3841_v59  ;;  %2028 = vmatmul.bf16.gmra.mxu3 %v3843_v34 }
 0x2d9   : > { %2119 = vst [vmem:[%s3904_s2 + $0xb0] sm:$0xff] %v2071_v50 }
 0x2da   : > { %v1784_v22 = vpop.f32.mrf.mxu2  ;;  %v1833_v27 = vpop.f32.mrf.mxu3 }
 0x2db   : > { %v1785_v60 = vadd.f32 %v1784_v22, %v4098_v15  ;;  %v1688_v56 = vpop.f32.mrf.mxu0  ;;  %v1737_v4 = vpop.f32.mrf.mxu1 }
 0x2dc   : > { %v1689_v41 = vadd.f32 %v1688_v56, %v4091_v62 }
 0x2dd   : > { %v1834_v3 = vadd.f32 %v1833_v27, %v1785_v60 }
 0x2de   : > { %v1738_v16 = vadd.f32 %v1737_v4, %v1689_v41 }
 0x2df   : > { %v2074_v25 = vpack.c.bf16 %v1834_v3, %v1736_v5 }
 0x2e1   : > { %2122 = vst [vmem:[%s3904_s2 + $0xc8] sm:$0xff] %v2074_v25 }
 0x2e2   : > { %v1786_v13 = vpop.f32.mrf.mxu2  ;;  %v1835_v59 = vpop.f32.mrf.mxu3 }
 0x2e3   : > { %v1787_v34 = vadd.f32 %v1786_v13, %v4098_v15  ;;  %v1691_v58 = vpop.f32.mrf.mxu0  ;;  %v1740_v45 = vpop.f32.mrf.mxu1  ;;  %v4177_v13 = vperm.slane %v4088_v51, 4 }
 0x2e4   : > { %v1692_v24 = vadd.f32 %v1691_v58, %v4091_v62 }
 0x2e5   : > { %v1836_v54 = vadd.f32 %v1835_v59, %v1787_v34  ;;  %v4180_v34 = vperm.slane %v4088_v51, 5 }
 0x2e6   : > { %1886 = vmatmul.bf16.gmra.mxu0 %v3953_v8  ;;  %1935 = vmatmul.bf16.gmra.mxu1 %v3955_v7  ;;  %v1741_v49 = vadd.f32 %v1740_v45, %v1692_v24 }
 0x2e7   : > { %v2077_v12 = vpack.c.bf16 %v1836_v54, %v1738_v16  ;;  %1984 = vmatmul.bf16.gmra.mxu2 %v3953_v8  ;;  %2033 = vmatmul.bf16.gmra.mxu3 %v3955_v7 }
 0x2e9   : > { %2125 = vst [vmem:[%s3904_s2 + $0xe0] sm:$0xff] %v2077_v12 }
 0x2ea   : > { %v1789_v0 = vpop.f32.mrf.mxu2  ;;  %v1838_v26 = vpop.f32.mrf.mxu3 }
 0x2eb   : > { %v1790_v40 = vadd.f32 %v1789_v0, %v4098_v15  ;;  %v1693_v63 = vpop.f32.mrf.mxu0  ;;  %v1742_v39 = vpop.f32.mrf.mxu1 }
 0x2ec   : > { %v1694_v29 = vadd.f32 %v1693_v63, %v4091_v62 }
 0x2ed   : > { %v1839_v48 = vadd.f32 %v1838_v26, %v1790_v40 }
 0x2ee   : > { %v1743_v19 = vadd.f32 %v1742_v39, %v1694_v29 }
 0x2ef   : > { %v2080_v32 = vpack.c.bf16 %v1839_v48, %v1741_v49 }
 0x2f1   : > { %2128 = vst [vmem:[%s3904_s2 + $0xf8] sm:$0xff] %v2080_v32 }
 0x2f2   : > { %v1791_v36 = vpop.f32.mrf.mxu2  ;;  %v1840_v8 = vpop.f32.mrf.mxu3 }
 0x2f3   : > { %v1792_v7 = vadd.f32 %v1791_v36, %v4098_v15  ;;  %v1696_v38 = vpop.f32.mrf.mxu0  ;;  %v1745_v11 = vpop.f32.mrf.mxu1 }
 0x2f4   : > { %v1697_v44 = vadd.f32 %v1696_v38, %v4091_v62 }
 0x2f5   : > { %v1841_v14 = vadd.f32 %v1840_v8, %v1792_v7 }
 0x2f6   : > { %1891 = vmatmul.bf16.gmra.mxu0 %v3991_v53  ;;  %1940 = vmatmul.bf16.gmra.mxu1 %v3995_v9  ;;  %v1746_v21 = vadd.f32 %v1745_v11, %v1697_v44 }
 0x2f7   : > { %v2083_v37 = vpack.c.bf16 %v1841_v14, %v1743_v19  ;;  %1989 = vmatmul.bf16.gmra.mxu2 %v3991_v53  ;;  %2038 = vmatmul.bf16.gmra.mxu3 %v3995_v9 }
 0x2f9   : > { %2131 = vst [vmem:[%s3904_s2 + $0x110] sm:$0xff] %v2083_v37 }
 0x2fa   : > { %v1794_v42 = vpop.f32.mrf.mxu2  ;;  %v1843_v52 = vpop.f32.mrf.mxu3 }
 0x2fb   : > { %v1795_v28 = vadd.f32 %v1794_v42, %v4098_v15  ;;  %v1698_v17 = vpop.f32.mrf.mxu0  ;;  %v1747_v20 = vpop.f32.mrf.mxu1 }
 0x2fc   : > { %v1699_v1 = vadd.f32 %v1698_v17, %v4091_v62 }
 0x2fd   : > { %v1844_v10 = vadd.f32 %v1843_v52, %v1795_v28 }
 0x2fe   : > { %v1748_v23 = vadd.f32 %v1747_v20, %v1699_v1 }
 0x2ff   : > { %v2086_v61 = vpack.c.bf16 %v1844_v10, %v1746_v21 }
 0x301   : > { %2134 = vst [vmem:[%s3904_s2 + $0x128] sm:$0xff] %v2086_v61 }
 0x302   : > { %v1796_v35 = vpop.f32.mrf.mxu2  ;;  %v1845_v53 = vpop.f32.mrf.mxu3 }
 0x303   : > { %v1797_v9 = vadd.f32 %v1796_v35, %v4098_v15  ;;  %v1701_v43 = vpop.f32.mrf.mxu0  ;;  %v1750_v33 = vpop.f32.mrf.mxu1 }
 0x304   : > { %v1702_v46 = vadd.f32 %v1701_v43, %v4091_v62 }
 0x305   : > { %v1846_v57 = vadd.f32 %v1845_v53, %v1797_v9 }
 0x306   : > { %1896 = vmatmul.bf16.gmra.mxu0 %v4021_v2  ;;  %1945 = vmatmul.bf16.gmra.mxu1 %v4023_v18  ;;  %v1751_v22 = vadd.f32 %v1750_v33, %v1702_v46 }
 0x307   : > { %v2089_v31 = vpack.c.bf16 %v1846_v57, %v1748_v23  ;;  %1994 = vmatmul.bf16.gmra.mxu2 %v4021_v2  ;;  %2043 = vmatmul.bf16.gmra.mxu3 %v4023_v18 }
 0x309   : > { %2137 = vst [vmem:[%s3904_s2 + $0x140] sm:$0xff] %v2089_v31 }
 0x30a   : > { %v1799_v6 = vpop.f32.mrf.mxu2  ;;  %v1848_v30 = vpop.f32.mrf.mxu3 }
 0x30b   : > { %v1800_v55 = vadd.f32 %v1799_v6, %v4098_v15  ;;  %v1703_v50 = vpop.f32.mrf.mxu0  ;;  %v1752_v47 = vpop.f32.mrf.mxu1 }
 0x30c   : > { %v1704_v56 = vadd.f32 %v1703_v50, %v4091_v62 }
 0x30d   : > { %v1849_v27 = vadd.f32 %v1848_v30, %v1800_v55 }
 0x30e   : > { %v1753_v25 = vadd.f32 %v1752_v47, %v1704_v56 }
 0x30f   : > { %v2092_v60 = vpack.c.bf16 %v1849_v27, %v1751_v22 }
 0x311   : > { %2140 = vst [vmem:[%s3904_s2 + $0x158] sm:$0xff] %v2092_v60 }
 0x312   : > { %v1801_v4 = vpop.f32.mrf.mxu2  ;;  %v1850_v2 = vpop.f32.mrf.mxu3 }
 0x313   : > { %v1802_v18 = vadd.f32 %v1801_v4, %v4098_v15  ;;  %v1862_v5 = vpop.f32.mrf.mxu0  ;;  %v1911_v3 = vpop.f32.mrf.mxu1 }
 0x314   : > { %v1863_v58 = vadd.f32 %v1862_v5, %v4177_v13 }
 0x315   : > { %v1851_v41 = vadd.f32 %v1850_v2, %v1802_v18 }
 0x316   : > { %v1912_v12 = vadd.f32 %v1911_v3, %v1863_v58 }
 0x317   : > { %v2095_v59 = vpack.c.bf16 %v1851_v41, %v1753_v25 }
 0x319   : > { %2143 = vst [vmem:[%s3904_s2 + $0x170] sm:$0xff] %v2095_v59 }
 0x31a   : > { %v1960_v62 = vpop.f32.mrf.mxu2  ;;  %v2009_v45 = vpop.f32.mrf.mxu3 }
 0x31b   : > { %v1961_v16 = vadd.f32 %v1960_v62, %v4180_v34  ;;  %v1864_v15 = vpop.f32.mrf.mxu0  ;;  %v1913_v54 = vpop.f32.mrf.mxu1 }
 0x31c   : > { %v1865_v26 = vadd.f32 %v1864_v15, %v4177_v13 }
 0x31d   : > { %v2010_v24 = vadd.f32 %v2009_v45, %v1961_v16 }
 0x31e   : > { %v1914_v48 = vadd.f32 %v1913_v54, %v1865_v26 }
 0x31f   : > { %v2051_v0 = vpack.c.bf16 %v2010_v24, %v1912_v12 }
 0x321   : > { %2099 = vst [vmem:[%s3904_s2 + $0x10] sm:$0xff] %v2051_v0 }
 0x322   : > { %v1962_v40 = vpop.f32.mrf.mxu2  ;;  %v2011_v63 = vpop.f32.mrf.mxu3 }
 0x323   : > { %v1963_v51 = vadd.f32 %v1962_v40, %v4180_v34  ;;  %v1867_v39 = vpop.f32.mrf.mxu0  ;;  %v1916_v49 = vpop.f32.mrf.mxu1 }
 0x324   : > { %v1868_v36 = vadd.f32 %v1867_v39, %v4177_v13 }
 0x325   : > { %v2012_v32 = vadd.f32 %v2011_v63, %v1963_v51 }
 0x326   : > { %v1917_v14 = vadd.f32 %v1916_v49, %v1868_v36 }
 0x327   : > { %v2054_v29 = vpack.c.bf16 %v2012_v32, %v1914_v48 }
 0x329   : > { %2102 = vst [vmem:[%s3904_s2 + $0x28] sm:$0xff] %v2054_v29 }
 0x32a   : > { %v1965_v8 = vpop.f32.mrf.mxu2  ;;  %v2014_v7 = vpop.f32.mrf.mxu3 }
 0x32b   : > { %v1966_v38 = vadd.f32 %v1965_v8, %v4180_v34  ;;  %v1869_v11 = vpop.f32.mrf.mxu0  ;;  %v1918_v19 = vpop.f32.mrf.mxu1 }
 0x32c   : > { %v1870_v42 = vadd.f32 %v1869_v11, %v4177_v13 }
 0x32d   : > { %v2015_v37 = vadd.f32 %v2014_v7, %v1966_v38 }
 0x32e   : > { %v1919_v10 = vadd.f32 %v1918_v19, %v1870_v42 }
 0x32f   : > { %v2057_v44 = vpack.c.bf16 %v2015_v37, %v1917_v14 }
 0x331   : > { %2105 = vst [vmem:[%s3904_s2 + $0x40] sm:$0xff] %v2057_v44 }
 0x332   : > { %v1967_v52 = vpop.f32.mrf.mxu2  ;;  %v2016_v28 = vpop.f32.mrf.mxu3 }
 0x333   : > { %v1968_v17 = vadd.f32 %v1967_v52, %v4180_v34  ;;  %v1872_v20 = vpop.f32.mrf.mxu0  ;;  %v1921_v21 = vpop.f32.mrf.mxu1 }
 0x334   : > { %v1873_v35 = vadd.f32 %v1872_v20, %v4177_v13 }
 0x335   : > { %v2017_v61 = vadd.f32 %v2016_v28, %v1968_v17 }
 0x336   : > { %v1922_v57 = vadd.f32 %v1921_v21, %v1873_v35 }
 0x337   : > { %v2060_v1 = vpack.c.bf16 %v2017_v61, %v1919_v10 }
 0x339   : > { %2108 = vst [vmem:[%s3904_s2 + $0x58] sm:$0xff] %v2060_v1 }
 0x33a   : > { %v1970_v53 = vpop.f32.mrf.mxu2  ;;  %v2019_v9 = vpop.f32.mrf.mxu3 }
 0x33b   : > { %v1971_v43 = vadd.f32 %v1970_v53, %v4180_v34  ;;  %v1874_v33 = vpop.f32.mrf.mxu0  ;;  %v1923_v23 = vpop.f32.mrf.mxu1 }
 0x33c   : > { %v1875_v6 = vadd.f32 %v1874_v33, %v4177_v13 }
 0x33d   : > { %v2020_v31 = vadd.f32 %v2019_v9, %v1971_v43 }
 0x33e   : > { %v1924_v27 = vadd.f32 %v1923_v23, %v1875_v6 }
 0x33f   : > { %v2063_v46 = vpack.c.bf16 %v2020_v31, %v1922_v57 }
 0x341   : > { %2111 = vst [vmem:[%s3904_s2 + $0x70] sm:$0xff] %v2063_v46 }
 0x342   : > { %v1972_v30 = vpop.f32.mrf.mxu2  ;;  %v2021_v55 = vpop.f32.mrf.mxu3 }
 0x343   : > { %v1973_v50 = vadd.f32 %v1972_v30, %v4180_v34  ;;  %v1877_v47 = vpop.f32.mrf.mxu0  ;;  %v1926_v22 = vpop.f32.mrf.mxu1 }
 0x344   : > { %v1878_v4 = vadd.f32 %v1877_v47, %v4177_v13 }
 0x345   : > { %v2022_v60 = vadd.f32 %v2021_v55, %v1973_v50 }
 0x346   : > { %v1927_v41 = vadd.f32 %v1926_v22, %v1878_v4 }
 0x347   : > { %v2066_v56 = vpack.c.bf16 %v2022_v60, %v1924_v27 }
 0x349   : > { %2114 = vst [vmem:[%s3904_s2 + $0x88] sm:$0xff] %v2066_v56 }
 0x34a   : > { %v1975_v2 = vpop.f32.mrf.mxu2  ;;  %v2024_v18 = vpop.f32.mrf.mxu3 }
 0x34b   : > { %v1976_v5 = vadd.f32 %v1975_v2, %v4180_v34  ;;  %v1879_v3 = vpop.f32.mrf.mxu0  ;;  %v1928_v25 = vpop.f32.mrf.mxu1 }
 0x34c   : > { %v1880_v62 = vadd.f32 %v1879_v3, %v4177_v13 }
 0x34d   : > { %v2025_v59 = vadd.f32 %v2024_v18, %v1976_v5 }
 0x34e   : > { %v1929_v24 = vadd.f32 %v1928_v25, %v1880_v62 }
 0x34f   : > { %v2069_v58 = vpack.c.bf16 %v2025_v59, %v1927_v41 }
 0x351   : > { %2117 = vst [vmem:[%s3904_s2 + $0xa0] sm:$0xff] %v2069_v58 }
 0x352   : > { %v1977_v45 = vpop.f32.mrf.mxu2  ;;  %v2026_v16 = vpop.f32.mrf.mxu3 }
 0x353   : > { %v1978_v15 = vadd.f32 %v1977_v45, %v4180_v34  ;;  %v1882_v54 = vpop.f32.mrf.mxu0  ;;  %v1931_v12 = vpop.f32.mrf.mxu1 }
 0x354   : > { %v1883_v40 = vadd.f32 %v1882_v54, %v4177_v13 }
 0x355   : > { %v2027_v0 = vadd.f32 %v2026_v16, %v1978_v15 }
 0x356   : > { %v1932_v32 = vadd.f32 %v1931_v12, %v1883_v40 }
 0x357   : > { %v2072_v26 = vpack.c.bf16 %v2027_v0, %v1929_v24 }
 0x359   : > { %2120 = vst [vmem:[%s3904_s2 + $0xb8] sm:$0xff] %v2072_v26 }
 0x35a   : > { %v1980_v63 = vpop.f32.mrf.mxu2  ;;  %v2029_v51 = vpop.f32.mrf.mxu3 }
 0x35b   : > { %v1981_v39 = vadd.f32 %v1980_v63, %v4180_v34  ;;  %v1884_v49 = vpop.f32.mrf.mxu0  ;;  %v1933_v48 = vpop.f32.mrf.mxu1 }
 0x35c   : > { %v1885_v8 = vadd.f32 %v1884_v49, %v4177_v13 }
 0x35d   : > { %v2030_v29 = vadd.f32 %v2029_v51, %v1981_v39 }
 0x35e   : > { %v1934_v37 = vadd.f32 %v1933_v48, %v1885_v8 }
 0x35f   : > { %v2075_v36 = vpack.c.bf16 %v2030_v29, %v1932_v32 }
 0x361   : > { %2123 = vst [vmem:[%s3904_s2 + $0xd0] sm:$0xff] %v2075_v36 }
 0x362   : > { %v1982_v7 = vpop.f32.mrf.mxu2  ;;  %v2031_v38 = vpop.f32.mrf.mxu3 }
 0x363   : > { %v1983_v11 = vadd.f32 %v1982_v7, %v4180_v34  ;;  %v1887_v19 = vpop.f32.mrf.mxu0  ;;  %v1936_v14 = vpop.f32.mrf.mxu1 }
 0x364   : > { %v1888_v52 = vadd.f32 %v1887_v19, %v4177_v13 }
 0x365   : > { %v2032_v44 = vadd.f32 %v2031_v38, %v1983_v11 }
 0x366   : > { %v1937_v61 = vadd.f32 %v1936_v14, %v1888_v52 }
 0x367   : > { %v2078_v42 = vpack.c.bf16 %v2032_v44, %v1934_v37 }
 0x369   : > { %2126 = vst [vmem:[%s3904_s2 + $0xe8] sm:$0xff] %v2078_v42 }
 0x36a   : > { %v1985_v28 = vpop.f32.mrf.mxu2  ;;  %v2034_v17 = vpop.f32.mrf.mxu3 }
 0x36b   : > { %v1986_v20 = vadd.f32 %v1985_v28, %v4180_v34  ;;  %v1889_v21 = vpop.f32.mrf.mxu0  ;;  %v1938_v10 = vpop.f32.mrf.mxu1 }
 0x36c   : > { %v1890_v53 = vadd.f32 %v1889_v21, %v4177_v13 }
 0x36d   : > { %v2035_v1 = vadd.f32 %v2034_v17, %v1986_v20 }
 0x36e   : > { %v1939_v57 = vadd.f32 %v1938_v10, %v1890_v53 }
 0x36f   : > { %v2081_v35 = vpack.c.bf16 %v2035_v1, %v1937_v61 }
 0x371   : > { %2129 = vst [vmem:[%s3904_s2 + $0x100] sm:$0xff] %v2081_v35 }
 0x372   : > { %v1987_v9 = vpop.f32.mrf.mxu2  ;;  %v2036_v43 = vpop.f32.mrf.mxu3 }
 0x373   : > { %v1988_v33 = vadd.f32 %v1987_v9, %v4180_v34  ;;  %v1892_v23 = vpop.f32.mrf.mxu0  ;;  %v1941_v46 = vpop.f32.mrf.mxu1 }
 0x374   : > { %v1893_v30 = vadd.f32 %v1892_v23, %v4177_v13 }
 0x375   : > { %v2037_v31 = vadd.f32 %v2036_v43, %v1988_v33 }
 0x376   : > { %v1942_v27 = vadd.f32 %v1941_v46, %v1893_v30 }
 0x377   : > { %v2084_v6 = vpack.c.bf16 %v2037_v31, %v1939_v57 }
 0x379   : > { %2132 = vst [vmem:[%s3904_s2 + $0x118] sm:$0xff] %v2084_v6 }
 0x37a   : > { %v1990_v55 = vpop.f32.mrf.mxu2  ;;  %v2039_v50 = vpop.f32.mrf.mxu3 }
 0x37b   : > { %v1991_v47 = vadd.f32 %v1990_v55, %v4180_v34  ;;  %v1894_v22 = vpop.f32.mrf.mxu0  ;;  %v1943_v4 = vpop.f32.mrf.mxu1 }
 0x37c   : > { %v1895_v2 = vadd.f32 %v1894_v22, %v4177_v13 }
 0x37d   : > { %v2040_v60 = vadd.f32 %v2039_v50, %v1991_v47 }
 0x37e   : > { %v1944_v41 = vadd.f32 %v1943_v4, %v1895_v2 }
 0x37f   : > { %v2087_v56 = vpack.c.bf16 %v2040_v60, %v1942_v27 }
 0x381   : > { %2135 = vst [vmem:[%s3904_s2 + $0x130] sm:$0xff] %v2087_v56 }
 0x382   : > { %v1992_v18 = vpop.f32.mrf.mxu2  ;;  %v2041_v5 = vpop.f32.mrf.mxu3 }
 0x383   : > { %v1993_v3 = vadd.f32 %v1992_v18, %v4180_v34  ;;  %v1897_v25 = vpop.f32.mrf.mxu0  ;;  %v1946_v45 = vpop.f32.mrf.mxu1 }
 0x384   : > { %v1898_v62 = vadd.f32 %v1897_v25, %v4177_v13 }
 0x385   : > { %v2042_v59 = vadd.f32 %v2041_v5, %v1993_v3 }
 0x386   : > { %v1947_v12 = vadd.f32 %v1946_v45, %v1898_v62 }
 0x387   : > { %v2090_v58 = vpack.c.bf16 %v2042_v59, %v1944_v41 }
 0x389   : > { %2138 = vst [vmem:[%s3904_s2 + $0x148] sm:$0xff] %v2090_v58 }
 0x38a   : > { %v1995_v16 = vpop.f32.mrf.mxu2  ;;  %v2044_v15 = vpop.f32.mrf.mxu3 }
 0x38b   : > { %v1996_v54 = vadd.f32 %v1995_v16, %v4180_v34  ;;  %v1899_v0 = vpop.f32.mrf.mxu0  ;;  %v1948_v39 = vpop.f32.mrf.mxu1 }
 0x38c   : > { %v1900_v40 = vadd.f32 %v1899_v0, %v4177_v13 }
 0x38d   : > { %v2045_v24 = vadd.f32 %v2044_v15, %v1996_v54 }
 0x38e   : > { %v1949_v48 = vadd.f32 %v1948_v39, %v1900_v40 }
 0x38f   : > { %v2093_v26 = vpack.c.bf16 %v2045_v24, %v1947_v12 }
 0x391   : > { %2141 = vst [vmem:[%s3904_s2 + $0x160] sm:$0xff] %v2093_v26 }
 0x392   : > { %v1997_v63 = vpop.f32.mrf.mxu2  ;;  %v2046_v49 = vpop.f32.mrf.mxu3 }
 0x393   : > { %v1998_v51 = vadd.f32 %v1997_v63, %v4180_v34 }
 0x395   : > { %v2047_v32 = vadd.f32 %v2046_v49, %v1998_v51 }
 0x397   : > { %v2096_v29 = vpack.c.bf16 %v2047_v32, %v1949_v48 }
 0x399   : > { %2144 = vst [vmem:[%s3904_s2 + $0x178] sm:$0xff] %v2096_v29 }
 0x39a   : > { %3119 = shalt.err (!%p3116_p0)
}
 0x39b   : > { %s3193_s17 = smov 384   ;;  %s3194_s6 = smov 24  }
 0x39c   : > { %2815 = dma.vmem_to_hbm [thread:$0]  (%p3326_p7), %s2162_s24, 6144, %s2164_s30, %s2146_s21, %s3193_s17, %s3193_s17, %s3194_s6  }
 0x39d PF: > { %s2178_s9 = sand.u32 1, %s3162_s18   ;;  %p2835_p3 = pnand %p2297_p9, %p3274_p6 }
 0x39e   : > { %s2179_s1 = scalar_lea.sflag [#allocation4], %s2178_s9 }
 0x39f   : > { %p2836_p5 = pneg %p2835_p3 }
 0x3a1   : > { %3157 = dma.done.wait (%p2836_p5), %s2179_s1, 6144  }
 0x3a2   : > { %3159 = vsyncadd (%p2836_p5), %s2179_s1, 4294961152  ;;  %s23_s23 = sadd.s32 1, %s3182_s23   ;;  %s4292_s18 = smov %s3166_s19 }
 0x3a3   : > { %p20_p10 = scmp.ge.s32.totalorder %s23_s23, 4   ;;  %s4293_s19 = smov %s3170_s20 }
 0x3a4   : > { %s4294_s20 = smov %s3335_s11  ;;  %s4295_s21 = smov %s3178_s22 }
 0x3a5   : > { %s4296_s22 = smov %s4298_s16  ;;  %22 = sbr.rel (!%p20_p10) target bundleno = 12 (0xc), region = 103 }
 0x3aa   :  { %2185 = vsyncpa [#allocation3], 1 }
 0x3ab   :  { %2187 = vsyncpa [#allocation3 + $0x1], 1 }
 0x3ac   :  { %2188 = vsyncpa [#allocation6], 1 }
 0x3ad   :  { %2189 = vsyncpa [#allocation9], 1 }
 0x3ae   :  { %2190 = vsyncpa [#allocation4], 1 }
 0x3af   :  { %2192 = vsyncpa [#allocation4 + $0x1], 1 }

</bundles_post_ra>
